<compile_context>
chip_gen: v7x
topology: tpu7x:2x2x1
jax: 0.10.0
libtpu: 0.0.40
codegen_flags: <defaults>
</compile_context>

<pallas_src>
import jax
import jax.numpy as jnp
import numpy as np
from jax.experimental import pallas as pl
from jax.experimental.pallas import tpu as pltpu


# ----------------------------------------------------------------------------
# Fused kernel: pool + normalize + logits + argmax + one-hot gather + conv_cat
# All heavy work is 2-D MXU matmuls; elementwise work is a handful of vregs.
# ----------------------------------------------------------------------------
def _fused_kernel(feat_ref, bdw1_ref, wcb_ref, cnt_ref, rsum_ref, rrep_ref,
                  colrep_ref, dmask_ref, out_ref, logits_ref, labels_ref):
    # feat_ref:   (B*D, S)    RoI features for this block, channel rows stacked per RoI
    # bdw1_ref:   (B*D, B*D)  kron(I_B, W1)        (constant, resident)
    # wcb_ref:    (C*D, S)    W2 @ centroid[c] + b, classes stacked (constant)
    # cnt_ref:    (B*D, C)    tiled centroids_norm.T (constant)
    # rsum_ref:   (B, B*D)    segment-sum selector  kron(I_B, 1_D^T) (constant)
    # rrep_ref:   (B*D, B)    row-repeat selector   rsum.T           (constant)
    # colrep_ref: (C, C*D)    column-repeat selector kron(I_C, 1_D^T)(constant)
    # dmask_ref:  (B*D, C*D)  tile(I_D, (B, C))                     (constant)
    fb = feat_ref[...]                                     # (B*D, S)
    s_dim = fb.shape[-1]
    blk, n_cls = logits_ref.shape
    inv_s = 1.0 / float(s_dim)

    # --- AvgPool2d((14,14)) as a lane reduction (tmp = S * pooled) -------------
    tmp = jnp.sum(fb, axis=-1, keepdims=True)              # (B*D, 1)

    # --- segmented (per-RoI) reductions via a constant selector matmul ---------
    #   raw[n,c]  = S * sum_d pooled[n,d] * cn[c,d]
    #   ssq[n]    = S^2 * sum_d pooled[n,d]^2
    raw = jnp.dot(rsum_ref[...], tmp * cnt_ref[...],
                  preferred_element_type=jnp.float32)       # (B, C)
    ssq = jnp.dot(rsum_ref[...], tmp * tmp,
                  preferred_element_type=jnp.float32)       # (B, 1)

    # --- L2 normalize with rsqrt (EUP slot), eps-clamped like F.normalize ------
    inv_norm = jax.lax.rsqrt(jnp.maximum(ssq * (inv_s * inv_s), 1e-24))  # (B, 1)
    logits = raw * (inv_s * inv_norm)                       # (B, C) cosine sims
    logits_ref[...] = logits

    # --- first-max argmax + exact one-hot (tie-broken labels, not logits==max) -
    col = jax.lax.broadcasted_iota(jnp.int32, (blk, n_cls), 1)
    mx = jnp.max(logits, axis=-1, keepdims=True)
    labels = jnp.min(jnp.where(logits == mx, col, n_cls),
                     axis=-1, keepdims=True)                # (B, 1) int32
    labels_ref[...] = labels
    one_hot = (col == labels).astype(jnp.float32)           # (B, C)

    # --- centroid gather as ONE matmul: kron(one_hot, I_D) @ wcb_v -------------
    big_oh = jnp.dot(
        jnp.dot(rrep_ref[...], one_hot, preferred_element_type=jnp.float32),
        colrep_ref[...], preferred_element_type=jnp.float32) * dmask_ref[...]
    gathered = jnp.dot(big_oh, wcb_ref[...],
                       preferred_element_type=jnp.float32)  # (B*D, S)

    # --- batched 1x1 conv as ONE matmul: kron(I_B, W1) @ feat_block ------------
    conv = jnp.dot(bdw1_ref[...], fb,
                   preferred_element_type=jnp.float32)      # (B*D, S)

    out_ref[...] = (conv + gathered).astype(out_ref.dtype)


class UnsupConcatFeaturePallas:
    """Pallas version of UnsupEmbedding_RoIHead.get_unsup_concate_feature (test path)."""

    def __init__(self, num_classes=7, feat_dim=32, spatial=14, roi_block=8, key=None):
        # roi_block: RoIs processed per grid step.  The block-diagonal conv matrix
        # kron(I_B, W1) has density 1/B, so keep B in 8..16 for feat_dim≈32; the
        # wasted MXU FLOPs stay well under the HBM/DMA floor while per-step bytes
        # (B * 2 * D * S * 4) stay large enough to amortize the ~0.35us step cost.
        self.num_classes = num_classes
        self.feat_dim = feat_dim
        self.spatial = spatial
        self.roi_block = roi_block
        key = jax.random.PRNGKey(0) if key is None else key
        k_c, k_w, k_b = jax.random.split(key, 3)
        # nn.Parameter(torch.randn(num_classes, feat_dim, 14, 14))
        self.centroids = jax.random.normal(
            k_c, (num_classes, feat_dim, spatial, spatial), jnp.float32)
        # nn.Conv2d(2*feat_dim, feat_dim, kernel_size=1): weight (D, 2D), bias (D,)
        fan_in = 2 * feat_dim
        self.conv_w = jax.random.normal(
            k_w, (feat_dim, 2 * feat_dim), jnp.float32) * np.sqrt(2.0 / fan_in)
        self.conv_b = jax.random.normal(k_b, (feat_dim,), jnp.float32) * 0.01

        D, B, C = feat_dim, roi_block, num_classes
        w1 = self.conv_w[:, :D]                                    # feature-channel half
        # --- parameter-only / block-structure constants (built once) -----------
        self._bdw1 = jnp.kron(jnp.eye(B, dtype=jnp.float32), w1)           # (B*D, B*D)
        self._rsum = jnp.kron(jnp.eye(B, dtype=jnp.float32),
                              jnp.ones((1, D), jnp.float32))               # (B, B*D)
        self._rrep = self._rsum.T                                          # (B*D, B)
        self._colrep = jnp.kron(jnp.eye(C, dtype=jnp.float32),
                                jnp.ones((1, D), jnp.float32))             # (C, C*D)
        self._dmask = jnp.tile(jnp.eye(D, dtype=jnp.float32), (B, C))      # (B*D, C*D)
        self._cnt_big, self._wcb_v = self._precompute_centroid_tables(self.centroids)
        # NOTE: fc_selector / pool_meta_embedding weights exist in the module but the
        # forward's concate path never uses fc_selector, so it is not materialized.

    def _precompute_centroid_tables(self, centroids):
        C, D, H, W = centroids.shape
        B = self.roi_block
        pooled_c = centroids.mean(axis=(2, 3))                              # (C, D)
        cn = pooled_c / jnp.maximum(
            jnp.linalg.norm(pooled_c, axis=1, keepdims=True), 1e-12)        # (C, D)
        cnt_big = jnp.tile(cn.T, (B, 1)).astype(jnp.float32)                # (B*D, C)
        w2 = self.conv_w[:, D:]                                             # (D, D)
        wcb = (jnp.einsum('od,kdhw->kohw', w2, centroids)
               + self.conv_b[None, :, None, None])                          # (C, D, H, W)
        wcb_v = wcb.reshape(C * D, H * W).astype(jnp.float32)               # (C*D, S)
        return cnt_big, wcb_v

    def __call__(self, bbox_feats, centroids=None):
        """bbox_feats: (N, D, H, W) float32 (NCHW, like PyTorch)."""
        N, D, H, W = bbox_feats.shape
        S = H * W
        B = self.roi_block
        C = self.num_classes
        if centroids is None:
            cnt_big, wcb_v = self._cnt_big, self._wcb_v
        else:
            cnt_big, wcb_v = self._precompute_centroid_tables(centroids)

        # Pad the RoI axis up to a multiple of the block size (padded rows are
        # computed and then sliced off).
        n_blocks = pl.cdiv(N, B)
        n_pad = n_blocks * B
        feats_f = bbox_feats.astype(jnp.float32)
        if n_pad != N:
            feats_f = jnp.pad(feats_f, ((0, n_pad - N), (0, 0), (0, 0), (0, 0)))
        feats_v = feats_f.reshape(n_pad * D, S)        # free contiguous reshape of NCHW

        full = lambda i: (0, 0)                        # resident parameter tables
        tiled = lambda i: (i, 0)                       # per-block feat / out rows

        grid_spec = pltpu.PrefetchScalarGridSpec(
            num_scalar_prefetch=0,
            grid=(n_blocks,),
            in_specs=[
                pl.BlockSpec((B * D, S), tiled),       # feat block
                pl.BlockSpec((B * D, B * D), full),    # kron(I_B, W1)
                pl.BlockSpec((C * D, S), full),        # wcb_v
                pl.BlockSpec((B * D, C), full),        # tiled centroids_norm.T
                pl.BlockSpec((B, B * D), full),        # rsum
                pl.BlockSpec((B * D, B), full),        # rrep
                pl.BlockSpec((C, C * D), full),        # colrep
                pl.BlockSpec((B * D, C * D), full),    # dmask
            ],
            out_specs=(
                pl.BlockSpec((B * D, S), tiled),       # out block
                pl.BlockSpec((B, C), tiled),           # logits
                pl.BlockSpec((B, 1), tiled),           # labels
            ),
        )

        out_v, logits, labels = pl.pallas_call(
            _fused_kernel,
            grid_spec=grid_spec,
            out_shape=(jax.ShapeDtypeStruct((n_pad * D, S), jnp.float32),
                       jax.ShapeDtypeStruct((n_pad, C), jnp.float32),
                       jax.ShapeDtypeStruct((n_pad, 1), jnp.int32)),
            compiler_params=pltpu.CompilerParams(
                dimension_semantics=("parallel",)),
        )(feats_v, self._bdw1, wcb_v, cnt_big,
          self._rsum, self._rrep, self._colrep, self._dmask)

        out = out_v[:N * D].reshape(N, D, H, W)
        return out, logits[:N], labels[:N, 0]


# ----------------------------------------------------------------------------
# Pure-JAX reference for correctness checking
# ----------------------------------------------------------------------------
def _reference(feats, centroids, conv_w, conv_b):
    pooled_f = feats.mean(axis=(2, 3))
    pooled_c = centroids.mean(axis=(2, 3))
    fn = pooled_f / jnp.maximum(
        jnp.linalg.norm(pooled_f, axis=1, keepdims=True), 1e-12)
    cn = pooled_c / jnp.maximum(
        jnp.linalg.norm(pooled_c, axis=1, keepdims=True), 1e-12)
    logits = fn @ cn.T
    labels = jnp.argmax(logits, axis=1)
    cat = jnp.concatenate([feats, centroids[labels]], axis=1)          # (N, 2D, H, W)
    out = jnp.einsum('oc,nchw->nohw', conv_w, cat) + conv_b[None, :, None, None]
    return out, logits, labels


if __name__ == "__main__":
    key = jax.random.PRNGKey(0)
    k_in, k_mod = jax.random.split(key)

    N, C, D, HW = 32, 7, 32, 14       # RoIs, classes, feat_dim, spatial (14x14 as in module)
    bbox_feats = jax.random.normal(k_in, (N, D, HW, HW), jnp.float32)

    head = UnsupConcatFeaturePallas(num_classes=C, feat_dim=D, spatial=HW,
                                    roi_block=8, key=k_mod)

    out, logits, labels = head(bbox_feats)
    out = jax.block_until_ready(out)

    ref_out, ref_logits, ref_labels = _reference(
        bbox_feats, head.centroids, head.conv_w, head.conv_b)

    assert np.allclose(np.asarray(logits), np.asarray(ref_logits), atol=1e-4), "logits mismatch"
    assert np.array_equal(np.asarray(labels), np.asarray(ref_labels)), "labels mismatch"
    assert np.allclose(np.asarray(out), np.asarray(ref_out), atol=1e-3, rtol=1e-3), "output mismatch"

    print("KERNEL_OK")
</pallas_src>

<mosaic_0001>
module attributes {stable_mosaic.version = 11 : i64} {
  func.func @_fused_kernel(%arg0: i32, %arg1: memref<256x196xf32, #tpu.memory_space<vmem>>, %arg2: memref<256x256xf32, #tpu.memory_space<vmem>>, %arg3: memref<224x196xf32, #tpu.memory_space<vmem>>, %arg4: memref<256x7xf32, #tpu.memory_space<vmem>>, %arg5: memref<8x256xf32, #tpu.memory_space<vmem>>, %arg6: memref<256x8xf32, #tpu.memory_space<vmem>>, %arg7: memref<7x224xf32, #tpu.memory_space<vmem>>, %arg8: memref<256x224xf32, #tpu.memory_space<vmem>>, %arg9: memref<256x196xf32, #tpu.memory_space<vmem>>, %arg10: memref<8x7xf32, #tpu.memory_space<vmem>>, %arg11: memref<8x1xi32, #tpu.memory_space<vmem>>) attributes {dimension_semantics = [#tpu.dimension_semantics<parallel>], iteration_bounds = array<i64: 4>, scalar_prefetch = 0 : i64, scratch_operands = 0 : i64, tpu.core_type = #tpu.core_type<tc>, window_params = [{transform_indices = @transform_0, window_bounds = array<i64: 256, 196>}, {pipeline_mode = #tpu.pipeline_mode<synchronous>, transform_indices = @transform_1, window_bounds = array<i64: 256, 256>}, {pipeline_mode = #tpu.pipeline_mode<synchronous>, transform_indices = @transform_2, window_bounds = array<i64: 224, 196>}, {pipeline_mode = #tpu.pipeline_mode<synchronous>, transform_indices = @transform_3, window_bounds = array<i64: 256, 7>}, {pipeline_mode = #tpu.pipeline_mode<synchronous>, transform_indices = @transform_4, window_bounds = array<i64: 8, 256>}, {pipeline_mode = #tpu.pipeline_mode<synchronous>, transform_indices = @transform_5, window_bounds = array<i64: 256, 8>}, {pipeline_mode = #tpu.pipeline_mode<synchronous>, transform_indices = @transform_6, window_bounds = array<i64: 7, 224>}, {pipeline_mode = #tpu.pipeline_mode<synchronous>, transform_indices = @transform_7, window_bounds = array<i64: 256, 224>}, {transform_indices = @transform_8, window_bounds = array<i64: 256, 196>}, {transform_indices = @transform_9, window_bounds = array<i64: 8, 7>}, {transform_indices = @transform_10, window_bounds = array<i64: 8, 1>}]} {
    %c0 = arith.constant 0 : index
    %c0_0 = arith.constant 0 : index
    %0 = vector.load %arg1[%c0, %c0_0] : memref<256x196xf32, #tpu.memory_space<vmem>>, vector<256x196xf32>
    %cst = arith.constant dense<0.000000e+00> : vector<256xf32>
    %1 = vector.multi_reduction <add>, %0, %cst [1] : vector<256x196xf32> to vector<256xf32>
    %2 = vector.shape_cast %1 : vector<256xf32> to vector<256x1xf32>
    %c0_1 = arith.constant 0 : index
    %c0_2 = arith.constant 0 : index
    %3 = vector.load %arg5[%c0_1, %c0_2] : memref<8x256xf32, #tpu.memory_space<vmem>>, vector<8x256xf32>
    %c0_3 = arith.constant 0 : index
    %c0_4 = arith.constant 0 : index
    %4 = vector.load %arg4[%c0_3, %c0_4] : memref<256x7xf32, #tpu.memory_space<vmem>>, vector<256x7xf32>
    %5 = vector.broadcast %2 : vector<256x1xf32> to vector<256x7xf32>
    %6 = arith.mulf %5, %4 : vector<256x7xf32>
    %cst_5 = arith.constant dense<0.000000e+00> : vector<8x7xf32>
    %7 = tpu.matmul %3, %6, %cst_5 {dimension_numbers = #tpu.dot_dimension_numbers<[1], [0], [0], [1], [0, 0, 1, 1], [], []>} : vector<8x256xf32>, vector<256x7xf32>, vector<8x7xf32> -> vector<8x7xf32>
    %c0_6 = arith.constant 0 : index
    %c0_7 = arith.constant 0 : index
    %8 = vector.load %arg5[%c0_6, %c0_7] : memref<8x256xf32, #tpu.memory_space<vmem>>, vector<8x256xf32>
    %9 = arith.mulf %2, %2 : vector<256x1xf32>
    %cst_8 = arith.constant dense<0.000000e+00> : vector<8x1xf32>
    %10 = tpu.matmul %8, %9, %cst_8 {dimension_numbers = #tpu.dot_dimension_numbers<[1], [0], [0], [1], [0, 0, 1, 1], [], []>} : vector<8x256xf32>, vector<256x1xf32>, vector<8x1xf32> -> vector<8x1xf32>
    %cst_9 = arith.constant 2.60308207E-5 : f32
    %11 = vector.broadcast %cst_9 : f32 to vector<8x1xf32>
    %12 = arith.mulf %10, %11 : vector<8x1xf32>
    %cst_10 = arith.constant 1.000000e-24 : f32
    %13 = vector.broadcast %cst_10 : f32 to vector<8x1xf32>
    %14 = arith.maximumf %12, %13 : vector<8x1xf32>
    %15 = math.rsqrt %14 : vector<8x1xf32>
    %cst_11 = arith.constant 0.00510204071 : f32
    %16 = vector.broadcast %cst_11 : f32 to vector<8x1xf32>
    %17 = arith.mulf %16, %15 : vector<8x1xf32>
    %18 = vector.broadcast %17 : vector<8x1xf32> to vector<8x7xf32>
    %19 = arith.mulf %7, %18 : vector<8x7xf32>
    %c0_12 = arith.constant 0 : index
    %c0_13 = arith.constant 0 : index
    %20 = vector.load %arg10[%c0_12, %c0_13] : memref<8x7xf32, #tpu.memory_space<vmem>>, vector<8x7xf32>
    tpu.vector_store %arg10[%c0_12, %c0_13], %19 {strides = array<i32>} : memref<8x7xf32, #tpu.memory_space<vmem>>, vector<8x7xf32>,
    %21 = tpu.iota {dimensions = array<i32: 1>} : vector<8x7xi32>
    %cst_14 = arith.constant dense<0xFF800000> : vector<8xf32>
    %22 = vector.multi_reduction <maximumf>, %19, %cst_14 [1] : vector<8x7xf32> to vector<8xf32>
    %23 = vector.shape_cast %22 : vector<8xf32> to vector<8x1xf32>
    %24 = vector.broadcast %23 : vector<8x1xf32> to vector<8x7xf32>
    %25 = arith.cmpf oeq, %19, %24 : vector<8x7xf32>
    %c7_i32 = arith.constant 7 : i32
    %26 = vector.broadcast %c7_i32 : i32 to vector<8x7xi32>
    %27 = arith.select %25, %21, %26 : vector<8x7xi1>, vector<8x7xi32>
    %cst_15 = arith.constant dense<2147483647> : vector<8xi32>
    %28 = vector.multi_reduction <minsi>, %27, %cst_15 [1] : vector<8x7xi32> to vector<8xi32>
    %29 = vector.shape_cast %28 : vector<8xi32> to vector<8x1xi32>
    %c0_16 = arith.constant 0 : index
    %c0_17 = arith.constant 0 : index
    %30 = vector.load %arg11[%c0_16, %c0_17] : memref<8x1xi32, #tpu.memory_space<vmem>>, vector<8x1xi32>
    tpu.vector_store %arg11[%c0_16, %c0_17], %29 {strides = array<i32>} : memref<8x1xi32, #tpu.memory_space<vmem>>, vector<8x1xi32>,
    %31 = vector.broadcast %29 : vector<8x1xi32> to vector<8x7xi32>
    %32 = arith.cmpi eq, %21, %31 : vector<8x7xi32>
    %33 = arith.extui %32 : vector<8x7xi1> to vector<8x7xi32>
    %34 = arith.sitofp %33 : vector<8x7xi32> to vector<8x7xf32>
    %c0_18 = arith.constant 0 : index
    %c0_19 = arith.constant 0 : index
    %35 = vector.load %arg6[%c0_18, %c0_19] : memref<256x8xf32, #tpu.memory_space<vmem>>, vector<256x8xf32>
    %cst_20 = arith.constant dense<0.000000e+00> : vector<256x7xf32>
    %36 = tpu.matmul %35, %34, %cst_20 {dimension_numbers = #tpu.dot_dimension_numbers<[1], [0], [0], [1], [0, 0, 1, 1], [], []>} : vector<256x8xf32>, vector<8x7xf32>, vector<256x7xf32> -> vector<256x7xf32>
    %c0_21 = arith.constant 0 : index
    %c0_22 = arith.constant 0 : index
    %37 = vector.load %arg7[%c0_21, %c0_22] : memref<7x224xf32, #tpu.memory_space<vmem>>, vector<7x224xf32>
    %cst_23 = arith.constant dense<0.000000e+00> : vector<256x224xf32>
    %38 = tpu.matmul %36, %37, %cst_23 {dimension_numbers = #tpu.dot_dimension_numbers<[1], [0], [0], [1], [0, 0, 1, 1], [], []>} : vector<256x7xf32>, vector<7x224xf32>, vector<256x224xf32> -> vector<256x224xf32>
    %c0_24 = arith.constant 0 : index
    %c0_25 = arith.constant 0 : index
    %39 = vector.load %arg8[%c0_24, %c0_25] : memref<256x224xf32, #tpu.memory_space<vmem>>, vector<256x224xf32>
    %40 = arith.mulf %38, %39 : vector<256x224xf32>
    %c0_26 = arith.constant 0 : index
    %c0_27 = arith.constant 0 : index
    %41 = vector.load %arg3[%c0_26, %c0_27] : memref<224x196xf32, #tpu.memory_space<vmem>>, vector<224x196xf32>
    %cst_28 = arith.constant dense<0.000000e+00> : vector<256x196xf32>
    %42 = tpu.matmul %40, %41, %cst_28 {dimension_numbers = #tpu.dot_dimension_numbers<[1], [0], [0], [1], [0, 0, 1, 1], [], []>} : vector<256x224xf32>, vector<224x196xf32>, vector<256x196xf32> -> vector<256x196xf32>
    %c0_29 = arith.constant 0 : index
    %c0_30 = arith.constant 0 : index
    %43 = vector.load %arg2[%c0_29, %c0_30] : memref<256x256xf32, #tpu.memory_space<vmem>>, vector<256x256xf32>
    %cst_31 = arith.constant dense<0.000000e+00> : vector<256x196xf32>
    %44 = tpu.matmul %43, %0, %cst_31 {dimension_numbers = #tpu.dot_dimension_numbers<[1], [0], [0], [1], [0, 0, 1, 1], [], []>} : vector<256x256xf32>, vector<256x196xf32>, vector<256x196xf32> -> vector<256x196xf32>
    %45 = arith.addf %44, %42 : vector<256x196xf32>
    %c0_32 = arith.constant 0 : index
    %c0_33 = arith.constant 0 : index
    %46 = vector.load %arg9[%c0_32, %c0_33] : memref<256x196xf32, #tpu.memory_space<vmem>>, vector<256x196xf32>
    tpu.vector_store %arg9[%c0_32, %c0_33], %45 {strides = array<i32>} : memref<256x196xf32, #tpu.memory_space<vmem>>, vector<256x196xf32>,
    return
  }
  func.func @transform_0(%arg0: i32) -> (i32, i32) {
    %c0_i32 = arith.constant 0 : i32
    %c0_i32_0 = arith.constant 0 : i32
    return %arg0, %c0_i32 : i32, i32
  }
  func.func @transform_1(%arg0: i32) -> (i32, i32) {
    %c0_i32 = arith.constant 0 : i32
    %c0_i32_0 = arith.constant 0 : i32
    %c0_i32_1 = arith.constant 0 : i32
    return %c0_i32, %c0_i32_0 : i32, i32
  }
  func.func @transform_2(%arg0: i32) -> (i32, i32) {
    %c0_i32 = arith.constant 0 : i32
    %c0_i32_0 = arith.constant 0 : i32
    %c0_i32_1 = arith.constant 0 : i32
    return %c0_i32, %c0_i32_0 : i32, i32
  }
  func.func @transform_3(%arg0: i32) -> (i32, i32) {
    %c0_i32 = arith.constant 0 : i32
    %c0_i32_0 = arith.constant 0 : i32
    %c0_i32_1 = arith.constant 0 : i32
    return %c0_i32, %c0_i32_0 : i32, i32
  }
  func.func @transform_4(%arg0: i32) -> (i32, i32) {
    %c0_i32 = arith.constant 0 : i32
    %c0_i32_0 = arith.constant 0 : i32
    %c0_i32_1 = arith.constant 0 : i32
    return %c0_i32, %c0_i32_0 : i32, i32
  }
  func.func @transform_5(%arg0: i32) -> (i32, i32) {
    %c0_i32 = arith.constant 0 : i32
    %c0_i32_0 = arith.constant 0 : i32
    %c0_i32_1 = arith.constant 0 : i32
    return %c0_i32, %c0_i32_0 : i32, i32
  }
  func.func @transform_6(%arg0: i32) -> (i32, i32) {
    %c0_i32 = arith.constant 0 : i32
    %c0_i32_0 = arith.constant 0 : i32
    %c0_i32_1 = arith.constant 0 : i32
    return %c0_i32, %c0_i32_0 : i32, i32
  }
  func.func @transform_7(%arg0: i32) -> (i32, i32) {
    %c0_i32 = arith.constant 0 : i32
    %c0_i32_0 = arith.constant 0 : i32
    %c0_i32_1 = arith.constant 0 : i32
    return %c0_i32, %c0_i32_0 : i32, i32
  }
  func.func @transform_8(%arg0: i32) -> (i32, i32) {
    %c0_i32 = arith.constant 0 : i32
    %c0_i32_0 = arith.constant 0 : i32
    return %arg0, %c0_i32 : i32, i32
  }
  func.func @transform_9(%arg0: i32) -> (i32, i32) {
    %c0_i32 = arith.constant 0 : i32
    %c0_i32_0 = arith.constant 0 : i32
    return %arg0, %c0_i32 : i32, i32
  }
  func.func @transform_10(%arg0: i32) -> (i32, i32) {
    %c0_i32 = arith.constant 0 : i32
    %c0_i32_0 = arith.constant 0 : i32
    return %arg0, %c0_i32 : i32, i32
  }
}

</mosaic_0001>

<bundles_post_ra>
// kernel: tpu_custom_call.1
= control target key start
LH: loop header
LB: loop body
LE: loop exit
PB: predicated region body
PF: predicated region fallthrough
CT: control target
= control target key end

     0   :  { %s3262_s13 = smov 0   ;;  %s4835_s0 = inlined_call_operand.vmem [shape: f32[1024,196], index: 0, kind: input, shape index: {}]   ;;  %s4836_s1 = inlined_call_operand.vmem [shape: f32[256,256], index: 1, kind: input, shape index: {}]   ;;  %s4837_s2 = inlined_call_operand.vmem [shape: f32[224,196], index: 2, kind: input, shape index: {}]   ;;  %s4838_s3 = inlined_call_operand.vmem [shape: f32[256,7], index: 3, kind: input, shape index: {}]   ;;  %s4839_s4 = inlined_call_operand.vmem [shape: f32[8,256], index: 4, kind: input, shape index: {}]   ;;  %s4840_s5 = inlined_call_operand.vmem [shape: f32[256,8], index: 5, kind: input, shape index: {}]   ;;  %s4841_s6 = inlined_call_operand.vmem [shape: f32[7,224], index: 6, kind: input, shape index: {}]   ;;  %s4842_s7 = inlined_call_operand.vmem [shape: f32[256,224], index: 7, kind: input, shape index: {}]   ;;  %s4843_s8 = inlined_call_operand.vmem [shape: f32[1024,196], index: 8, kind: output, shape index: {0}]   ;;  %s4844_s9 = inlined_call_operand.vmem [shape: f32[32,7], index: 9, kind: output, shape index: {1}]   ;;  %s4845_s10 = inlined_call_operand.vmem [shape: s32[32,1], index: 10, kind: output, shape index: {2}]  }
   0x1 LB: > { %s3268_s14 = sadd.s32 4294967295, %s3202_s13   ;;  %p2622_p0 = scmp.ge.s32.totalorder %s3202_s13, 1  ;;  %s3202_s13 = sphi %s3262_s13, %s21_s13  }
   0x2   : > { %p319_p1 = scmp.lt.s32.totalorder %s3202_s13, 5 }
   0x4   : > { %p320_p2 = pnand %p2622_p0, %p319_p1 }
   0x5   : > { %s2623_s15 = sshll.u32 (!%p320_p2), %s3268_s14, 5  ;;  %vm453_vm0 = vcmask (!%p320_p2), 556032   ;;  %p381_p4 = scmp.lt.s32.totalorder (!%p320_p2), %s3268_s14, 3  ;;  %vm830_vm1 = vcmask (!%p320_p2), 56320   ;;  %vm891_vm4 = vcmask (!%p320_p2), 64512   ;;  %vm854_vm5 = vcmask (!%p320_p2), 7168  }
   0x6   : > { %323 = sbr.rel (%p320_p2) target bundleno = 1834 (0x72a), region = 52  ;;  %p368_p3 = scmp.lt.s32.totalorder (!%p320_p2), %s2623_s15, 127  ;;  %vm1311_vm7 = vcmask (!%p320_p2), 1046528   ;;  %vm1759_vm8 = vcmask (!%p320_p2), 785408  }
   0xd   : > { %s4847_s15 = smov (!%p368_p3, %s2623_s15), 127  ;;  %s4849_s14 = smov (!%p381_p4, %s3268_s14), 3 }
   0xe   : > { %s2733_s16 = sshll.u32 %s4847_s15, 4  ;;  %s2629_s28 = sshll.u32 %s4849_s14, 3 }
   0xf   : > { %s3281_s19 = scalar_lea.vmem %s4835_s0, %s2733_s16  ;;  %s384_s11 = scalar_lea.vmem %s4844_s9, %s2629_s28 }
  0x10   : > { %v421_v0 = vld [vmem:[%s3281_s19 + $0x100] sm:$0xff]  ;;  %v422_v1 = vld [vmem:[%s3281_s19 + $0x108] sm:$0xff]  ;;  %v423_v2 = vld [vmem:[%s3281_s19 + $0x110] sm:$0xff]  ;;  %s388_s21 = scalar_lea.vmem %s4845_s10, %s2629_s28  ;;  %s4686_s14 = scalar_lea.vmem %s4843_s8, %s2733_s16 }
  0x11   : > { %v424_v3 = vld [vmem:[%s3281_s19 + $0x118] sm:$0xff]  ;;  %v518_v4 = vsel %vm453_vm0, %v422_v1, 0.0  ;;  %v3288_v5 = vpack.c.bf16 %v423_v2, %v421_v0  ;;  %v389_v6 = vld [vmem:[%s3281_s19] sm:$0xff]  ;;  %v390_v7 = vld [vmem:[%s3281_s19 + $0x8] sm:$0xff] }
  0x12   : > { %v519_v8 = vadd.f32 %v518_v4, %v421_v0  ;;  %v3292_v9 = vpack.c.bf16 %v424_v3, %v422_v1  ;;  %v391_v10 = vld [vmem:[%s3281_s19 + $0x10] sm:$0xff]  ;;  %v392_v11 = vld [vmem:[%s3281_s19 + $0x18] sm:$0xff]  ;;  %v454_v12 = vsel %vm453_vm0, %v390_v7, 0.0  ;;  %v522_v13 = vsel %vm453_vm0, %v424_v3, 0.0  ;;  %v425_v14 = vld [vmem:[%s3281_s19 + $0x120] sm:$0xff] }
  0x13   : > { %v455_v15 = vadd.f32 %v454_v12, %v389_v6  ;;  %v3299_v16 = vpack.c.bf16 %v392_v11, %v390_v7  ;;  %v3301_v17 = vpack.c.bf16 %v391_v10, %v389_v6  ;;  %v426_v18 = vld [vmem:[%s3281_s19 + $0x128] sm:$0xff]  ;;  %v427_v19 = vld [vmem:[%s3281_s19 + $0x130] sm:$0xff]  ;;  %v428_v20 = vld [vmem:[%s3281_s19 + $0x138] sm:$0xff]  ;;  %v523_v21 = vadd.f32 %v522_v13, %v423_v2 }
  0x14   : > { %520 = vadd.xlane.f32.xlu0 %v519_v8  ;;  %v458_v22 = vsel %vm453_vm0, %v392_v11, 0.0  ;;  %v3307_v23 = vpack.c.bf16 %v427_v19, %v425_v14  ;;  %v526_v25 = vsel %vm453_vm0, %v426_v18, 0.0  ;;  %v393_v26 = vld [vmem:[%s3281_s19 + $0x20] sm:$0xff]  ;;  %v395_v27 = vld [vmem:[%s3281_s19 + $0x30] sm:$0xff]  ;;  %v530_v28 = vsel %vm453_vm0, %v428_v20, 0.0  ;;  %v3314_v29 = vld [vmem:[%s3281_s19 + $0x28] sm:$0xff] }
  0x15   : > { %456 = vadd.xlane.f32.xlu1 %v455_v15  ;;  %v459_v24 = vadd.f32 %v458_v22, %v391_v10  ;;  %v3316_v30 = vpack.c.bf16 %v395_v27, %v393_v26  ;;  %v429_v31 = vld [vmem:[%s3281_s19 + $0x140] sm:$0xff]  ;;  %v431_v32 = vld [vmem:[%s3281_s19 + $0x150] sm:$0xff]  ;;  %v3321_v33 = vld [vmem:[%s3281_s19 + $0x38] sm:$0xff]  ;;  %v527_v37 = vadd.f32 %v526_v25, %v425_v14  ;;  %v531_v41 = vadd.f32 %v530_v28, %v427_v19 }
  0x16   : > { %v3323_v34 = vpack.c.bf16 %v431_v32, %v429_v31  ;;  %v397_v35 = vld [vmem:[%s3281_s19 + $0x40] sm:$0xff]  ;;  %v399_v36 = vld [vmem:[%s3281_s19 + $0x50] sm:$0xff]  ;;  %v462_v42 = vsel %vm453_vm0, %v3314_v29, 0.0  ;;  %v466_v44 = vsel %vm453_vm0, %v3321_v33, 0.0  ;;  %v430_v45 = vld [vmem:[%s3281_s19 + $0x148] sm:$0xff] }
  0x17   : > { %v3327_v38 = vpack.c.bf16 %v399_v36, %v397_v35  ;;  %v433_v39 = vld [vmem:[%s3281_s19 + $0x160] sm:$0xff]  ;;  %v435_v40 = vld [vmem:[%s3281_s19 + $0x170] sm:$0xff]  ;;  %v432_v48 = vld [vmem:[%s3281_s19 + $0x158] sm:$0xff]  ;;  %v463_v52 = vadd.f32 %v462_v42, %v393_v26  ;;  %v467_v56 = vadd.f32 %v466_v44, %v395_v27  ;;  %v534_v57 = vsel %vm453_vm0, %v430_v45, 0.0 }
  0x18   : > { %524 = vadd.xlane.f32.xlu0 %v523_v21  ;;  %v3333_v43 = vpack.c.bf16 %v435_v40, %v433_v39  ;;  %v401_v46 = vld [vmem:[%s3281_s19 + $0x60] sm:$0xff]  ;;  %v403_v47 = vld [vmem:[%s3281_s19 + $0x70] sm:$0xff]  ;;  %v538_v59 = vsel %vm453_vm0, %v432_v48, 0.0  ;;  %v3366_v60 = vld [vmem:[%s3281_s19 + $0x48] sm:$0xff]  ;;  %v535_v3 = vadd.f32 %v534_v57, %v429_v31 }
  0x19   : > { %460 = vadd.xlane.f32.xlu1 %v459_v24  ;;  %v3341_v49 = vpack.c.bf16 %v403_v47, %v401_v46  ;;  %v3344_v50 = vld [vmem:[%s3281_s19 + $0x180] sm:$0xff]  ;;  %v3347_v51 = vld [vmem:[%s3281_s19 + $0x190] sm:$0xff]  ;;  %v3375_v63 = vld [vmem:[%s3281_s19 + $0x58] sm:$0xff]  ;;  %v539_v8 = vadd.f32 %v538_v59, %v431_v32  ;;  %v470_v10 = vsel %vm453_vm0, %v3366_v60, 0.0 }
  0x1a   : > { %v3351_v53 = vpack.c.bf16 %v3347_v51, %v3344_v50  ;;  %v3354_v54 = vld [vmem:[%s3281_s19 + $0x80] sm:$0xff]  ;;  %v3357_v55 = vld [vmem:[%s3281_s19 + $0x90] sm:$0xff]  ;;  %v474_v12 = vsel %vm453_vm0, %v3375_v63, 0.0  ;;  %v434_v13 = vld [vmem:[%s3281_s19 + $0x168] sm:$0xff]  ;;  %v471_v22 = vadd.f32 %v470_v10, %v397_v35 }
  0x1b   : > { %v3362_v58 = vpack.c.bf16 %v3357_v55, %v3354_v54  ;;  %v3369_v61 = vld [vmem:[%s3281_s19 + $0x1a0] sm:$0xff]  ;;  %v3372_v62 = vld [vmem:[%s3281_s19 + $0x1b0] sm:$0xff]  ;;  %v436_v18 = vld [vmem:[%s3281_s19 + $0x178] sm:$0xff]  ;;  %v475_v27 = vadd.f32 %v474_v12, %v399_v36  ;;  %v542_v28 = vsel %vm453_vm0, %v434_v13, 0.0 }
  0x1c   : > { %528 = vadd.xlane.f32.xlu0 %v527_v37  ;;  %v3379_v0 = vpack.c.bf16 %v3372_v62, %v3369_v61  ;;  %v3382_v1 = vld [vmem:[%s3281_s19 + $0xa0] sm:$0xff]  ;;  %v3385_v2 = vld [vmem:[%s3281_s19 + $0xb0] sm:$0xff]  ;;  %v546_v32 = vsel %vm453_vm0, %v436_v18, 0.0  ;;  %v3440_v35 = vld [vmem:[%s3281_s19 + $0x68] sm:$0xff] }
  0x1d   : > { %532 = vadd.xlane.f32.xlu1 %v531_v41  ;;  %v3389_v4 = vpack.c.bf16 %v3385_v2, %v3382_v1  ;;  %v3392_v6 = vld [vmem:[%s3281_s19 + $0x1c0] sm:$0xff]  ;;  %v3395_v7 = vld [vmem:[%s3281_s19 + $0x1d0] sm:$0xff]  ;;  %v3443_v37 = vld [vmem:[%s3281_s19 + $0x78] sm:$0xff]  ;;  %v543_v41 = vadd.f32 %v542_v28, %v433_v39  ;;  %v547_v42 = vadd.f32 %v546_v32, %v435_v40  ;;  %v478_v36 = vsel %vm453_vm0, %v3440_v35, 0.0 }
  0x1e   : > { %v3401_v11 = vpack.c.bf16 %v3395_v7, %v3392_v6  ;;  %v3407_v14 = vld [vmem:[%s3281_s19 + $0xc0] sm:$0xff]  ;;  %v3410_v15 = vld [vmem:[%s3281_s19 + $0xd0] sm:$0xff]  ;;  %v482_v44 = vsel %vm453_vm0, %v3443_v37, 0.0  ;;  %v438_v45 = vld [vmem:[%s3281_s19 + $0x188] sm:$0xff] }
  0x1f   : > { %v3415_v19 = vpack.c.bf16 %v3410_v15, %v3407_v14  ;;  %v3418_v20 = vld [vmem:[%s3281_s19 + $0x1e0] sm:$0xff]  ;;  %v3421_v21 = vld [vmem:[%s3281_s19 + $0x1f0] sm:$0xff]  ;;  %v440_v48 = vld [vmem:[%s3281_s19 + $0x198] sm:$0xff]  ;;  %v550_v57 = vsel %vm453_vm0, %v438_v45, 0.0 }
  0x20   : > { %464 = vadd.xlane.f32.xlu0 %v463_v52  ;;  %v3425_v24 = vpack.c.bf16 %v3421_v21, %v3418_v20  ;;  %v3428_v25 = vld [vmem:[%s3281_s19 + $0xe0] sm:$0xff]  ;;  %v3431_v26 = vld [vmem:[%s3281_s19 + $0xf0] sm:$0xff]  ;;  %v479_v52 = vadd.f32 %v478_v36, %v401_v46  ;;  %v554_v39 = vsel %vm453_vm0, %v440_v48, 0.0  ;;  %v3454_v59 = vld [vmem:[%s3281_s19 + $0x88] sm:$0xff] }
  0x21   : > { %468 = vadd.xlane.f32.xlu1 %v467_v56  ;;  %v3436_v31 = vpack.c.bf16 %v3431_v26, %v3428_v25  ;;  %v483_v56 = vadd.f32 %v482_v44, %v403_v47  ;;  %v3457_v40 = vld [vmem:[%s3281_s19 + $0x98] sm:$0xff]  ;;  %v486_v46 = vsel %vm453_vm0, %v3454_v59, 0.0  ;;  %v442_v10 = vld [vmem:[%s3281_s19 + $0x1a8] sm:$0xff] }
  0x22   : > { %v490_v47 = vsel %vm453_vm0, %v3457_v40, 0.0  ;;  %v444_v12 = vld [vmem:[%s3281_s19 + $0x1b8] sm:$0xff]  ;;  %v487_v13 = vadd.f32 %v486_v46, %v3354_v54  ;;  %v3490_v45 = vld [vmem:[%s3281_s19 + $0xc8] sm:$0xff] }
  0x23   : > { %v491_v18 = vadd.f32 %v490_v47, %v3357_v55  ;;  %v3493_v48 = vld [vmem:[%s3281_s19 + $0xd8] sm:$0xff]  ;;  %v3508_v47 = vld [vmem:[%s3281_s19 + $0xe8] sm:$0xff] }
  0x24   : > { %536 = vadd.xlane.f32.xlu0 %v535_v3  ;;  %v551_v3 = vadd.f32 %v550_v57, %v3344_v50  ;;  %v558_v50 = vsel %vm453_vm0, %v442_v10, 0.0  ;;  %v450_v57 = vld [vmem:[%s3281_s19 + $0x1e8] sm:$0xff] }
  0x25   : > { %540 = vadd.xlane.f32.xlu1 %v539_v8  ;;  %v555_v8 = vadd.f32 %v554_v39, %v3347_v51  ;;  %v562_v51 = vsel %vm453_vm0, %v444_v12, 0.0  ;;  %v559_v28 = vadd.f32 %v558_v50, %v3369_v61  ;;  %v452_v39 = vld [vmem:[%s3281_s19 + $0x1f8] sm:$0xff]  ;;  %v574_v46 = vsel %vm453_vm0, %v450_v57, 0.0 }
  0x26   : > { %v563_v32 = vadd.f32 %v562_v51, %v3372_v62  ;;  %v575_v10 = vadd.f32 %v574_v46, %v3418_v20  ;;  %v583_v20 = vld [vmem:[%s4839_s4 + $0x8] sm:$0xff]  ;;  %v600_v51 = vld [vmem:[%s4838_s3 + $0x80] sm:$0xff] }
  0x27   : > { %814 = vmatprep.mubr.f32.mxu1 %v583_v20  ;;  %712 = vmatprep.mubr.f32.mxu0 %v583_v20 }
  0x28   : > { %472 = vadd.xlane.f32.xlu0 %v471_v22  ;;  %v3472_v22 = vld [vmem:[%s3281_s19 + $0xa8] sm:$0xff] }
  0x29   : > { %476 = vadd.xlane.f32.xlu1 %v475_v27  ;;  %v3475_v27 = vld [vmem:[%s3281_s19 + $0xb8] sm:$0xff]  ;;  %v494_v54 = vsel %vm453_vm0, %v3472_v22, 0.0 }
  0x2a   : > { %v498_v55 = vsel %vm453_vm0, %v3475_v27, 0.0  ;;  %v495_v36 = vadd.f32 %v494_v54, %v3382_v1  ;;  %v502_v1 = vsel %vm453_vm0, %v3490_v45, 0.0 }
  0x2b   : > { %v499_v44 = vadd.f32 %v498_v55, %v3385_v2  ;;  %v506_v2 = vsel %vm453_vm0, %v3493_v48, 0.0 }
  0x2c   : > { %544 = vadd.xlane.f32.xlu0 %v543_v41  ;;  %v446_v41 = vld [vmem:[%s3281_s19 + $0x1c8] sm:$0xff] }
  0x2d   : > { %548 = vadd.xlane.f32.xlu1 %v547_v42  ;;  %v448_v42 = vld [vmem:[%s3281_s19 + $0x1d8] sm:$0xff]  ;;  %v566_v61 = vsel %vm453_vm0, %v446_v41, 0.0 }
  0x2e   : > { %v570_v62 = vsel %vm453_vm0, %v448_v42, 0.0 }
  0x30   : > { %480 = vadd.xlane.f32.xlu0 %v479_v52  ;;  %v567_v52 = vadd.f32 %v566_v61, %v3392_v6  ;;  %v578_v6 = vsel %vm453_vm0, %v452_v39, 0.0 }
  0x31   : > { %484 = vadd.xlane.f32.xlu1 %v483_v56  ;;  %v571_v56 = vadd.f32 %v570_v62, %v3395_v7  ;;  %v3511_v7 = vld [vmem:[%s3281_s19 + $0xf8] sm:$0xff]  ;;  %v579_v12 = vadd.f32 %v578_v6, %v3421_v21 }
  0x34   : > { %552 = vadd.xlane.f32.xlu0 %v551_v3  ;;  %v503_v3 = vadd.f32 %v502_v1, %v3407_v14  ;;  %v510_v14 = vsel %vm453_vm0, %v3508_v47, 0.0  ;;  %v603_v1 = vld [vmem:[%s4838_s3 + $0x98] sm:$0xff] }
  0x35   : > { %556 = vadd.xlane.f32.xlu1 %v555_v8  ;;  %v507_v8 = vadd.f32 %v506_v2, %v3410_v15  ;;  %v514_v15 = vsel %vm453_vm0, %v3511_v7, 0.0 }
  0x38   : > { %488 = vadd.xlane.f32.xlu0 %v487_v13  ;;  %v511_v13 = vadd.f32 %v510_v14, %v3428_v25  ;;  %v601_v25 = vld [vmem:[%s4838_s3 + $0x88] sm:$0xff] }
  0x39   : > { %492 = vadd.xlane.f32.xlu1 %v491_v18  ;;  %v515_v18 = vadd.f32 %v514_v15, %v3431_v26  ;;  %v584_v26 = vld [vmem:[%s4838_s3] sm:$0xff]  ;;  %v586_v15 = vld [vmem:[%s4838_s3 + $0x10] sm:$0xff] }
  0x3c   : > { %560 = vadd.xlane.f32.xlu0 %v559_v28  ;;  %v585_v28 = vld [vmem:[%s4838_s3 + $0x8] sm:$0xff] }
  0x3d   : > { %564 = vadd.xlane.f32.xlu1 %v563_v32 }
  0x40   : > { %496 = vadd.xlane.f32.xlu0 %v495_v36 }
  0x41   : > { %500 = vadd.xlane.f32.xlu1 %v499_v44 }
  0x44   : > { %568 = vadd.xlane.f32.xlu0 %v567_v52 }
  0x45   : > { %572 = vadd.xlane.f32.xlu1 %v571_v56  ;;  %v602_v56 = vld [vmem:[%s4838_s3 + $0x90] sm:$0xff] }
  0x48   : > { %504 = vadd.xlane.f32.xlu0 %v503_v3 }
  0x49   : > { %508 = vadd.xlane.f32.xlu1 %v507_v8 }
  0x4c   : > { %576 = vadd.xlane.f32.xlu0 %v575_v10 }
  0x4d   : > { %580 = vadd.xlane.f32.xlu1 %v579_v12 }
  0x50   : > { %512 = vadd.xlane.f32.xlu0 %v511_v13  ;;  %v587_v13 = vld [vmem:[%s4838_s3 + $0x18] sm:$0xff] }
  0x51   : > { %516 = vadd.xlane.f32.xlu1 %v515_v18 }
  0xa1   : > { %v521_v21 = vpop.xlane.xlu0 %520 }
  0xa2   : > { %v457_v50 = vpop.xlane.xlu1 %456  ;;  %v632_v54 = vmul.f32 %v600_v51, %v521_v21  ;;  %v734_v55 = vmul.f32 %v521_v21, %v521_v21 }
  0xa3   : > { %v616_v44 = vmul.f32 %v584_v26, %v457_v50  ;;  %v718_v61 = vmul.f32 %v457_v50, %v457_v50 }
  0xa5   : > { %v525_v32 = vpop.xlane.xlu0 %524 }
  0xa6   : > { %v633_v41 = vmul.f32 %v601_v25, %v525_v32  ;;  %v735_v42 = vmul.f32 %v525_v32, %v525_v32  ;;  %v461_v36 = vpop.xlane.xlu1 %460  ;;  %v604_v32 = vld [vmem:[%s4838_s3 + $0xa0] sm:$0xff] }
  0xa7   : > { %v617_v62 = vmul.f32 %v585_v28, %v461_v36  ;;  %v719_v52 = vmul.f32 %v461_v36, %v461_v36 }
  0xa8   : > { %v2888_v2 = vpack.c.bf16 %v633_v41, %v632_v54  ;;  %v2920_v57 = vpack.c.bf16 %v735_v42, %v734_v55  ;;  %v605_v54 = vld [vmem:[%s4838_s3 + $0xa8] sm:$0xff] }
  0xa9   : > { %v529_v39 = vpop.xlane.xlu0 %528  ;;  %v2890_v3 = vpack.c.bf16 %v617_v62, %v616_v44  ;;  %v2922_v8 = vpack.c.bf16 %v719_v52, %v718_v61 }
  0xaa   : > { %v634_v46 = vmul.f32 %v602_v56, %v529_v39  ;;  %v736_v6 = vmul.f32 %v529_v39, %v529_v39  ;;  %v533_v10 = vpop.xlane.xlu1 %532  ;;  %2889 = vmatprep.subr.bf16.mxu0 %v2888_v2  ;;  %2921 = vmatprep.subr.bf16.mxu1 %v2920_v57  ;;  %v588_v56 = vld [vmem:[%s4838_s3 + $0x20] sm:$0xff] }
  0xab   : > { %v635_v12 = vmul.f32 %v603_v1, %v533_v10  ;;  %v737_v14 = vmul.f32 %v533_v10, %v533_v10  ;;  %2891 = vmatpush3.bf16.msra.mxu0 %v2890_v3  ;;  %2923 = vmatpush3.bf16.msra.mxu1 %v2922_v8  ;;  %v589_v1 = vld [vmem:[%s4838_s3 + $0x28] sm:$0xff] }
  0xad   : > { %v2892_v18 = vpack.c.bf16 %v635_v12, %v634_v46  ;;  %v2924_v20 = vpack.c.bf16 %v737_v14, %v736_v6  ;;  %v465_v21 = vpop.xlane.xlu0 %464  ;;  %v606_v12 = vld [vmem:[%s4838_s3 + $0xb0] sm:$0xff]  ;;  %v607_v14 = vld [vmem:[%s4838_s3 + $0xb8] sm:$0xff] }
  0xae   : > { %v618_v50 = vmul.f32 %v586_v15, %v465_v21  ;;  %v720_v51 = vmul.f32 %v465_v21, %v465_v21  ;;  %v469_v25 = vpop.xlane.xlu1 %468 }
  0xaf   : > { %v619_v26 = vmul.f32 %v587_v13, %v469_v25  ;;  %v721_v28 = vmul.f32 %v469_v25, %v469_v25  ;;  %2893 = vmatprep.subr.bf16.mxu0 %v2892_v18  ;;  %2925 = vmatprep.subr.bf16.mxu1 %v2924_v20 }
  0xb1   : > { %v2894_v55 = vpack.c.bf16 %v619_v26, %v618_v50  ;;  %v2926_v41 = vpack.c.bf16 %v721_v28, %v720_v51  ;;  %v537_v42 = vpop.xlane.xlu0 %536  ;;  %v590_v26 = vld [vmem:[%s4838_s3 + $0x30] sm:$0xff]  ;;  %v591_v28 = vld [vmem:[%s4838_s3 + $0x38] sm:$0xff] }
  0xb2   : > { %v636_v36 = vmul.f32 %v604_v32, %v537_v42  ;;  %v738_v44 = vmul.f32 %v537_v42, %v537_v42  ;;  %v541_v61 = vpop.xlane.xlu1 %540 }
  0xb3   : > { %v637_v62 = vmul.f32 %v605_v54, %v541_v61  ;;  %v739_v52 = vmul.f32 %v541_v61, %v541_v61  ;;  %2895 = vmatpush3.bf16.msra.mxu0 %v2894_v55  ;;  %2927 = vmatpush3.bf16.msra.mxu1 %v2926_v41 }
  0xb5   : > { %v2896_v2 = vpack.c.bf16 %v637_v62, %v636_v36  ;;  %v2928_v57 = vpack.c.bf16 %v739_v52, %v738_v44  ;;  %v473_v39 = vpop.xlane.xlu0 %472  ;;  %v608_v62 = vld [vmem:[%s4838_s3 + $0xc0] sm:$0xff]  ;;  %v609_v52 = vld [vmem:[%s4838_s3 + $0xc8] sm:$0xff] }
  0xb6   : > { %v620_v3 = vmul.f32 %v588_v56, %v473_v39  ;;  %v722_v8 = vmul.f32 %v473_v39, %v473_v39  ;;  %v477_v46 = vpop.xlane.xlu1 %476 }
  0xb7   : > { %v621_v6 = vmul.f32 %v589_v1, %v477_v46  ;;  %v723_v10 = vmul.f32 %v477_v46, %v477_v46  ;;  %2897 = vmatprep.subr.bf16.mxu0 %v2896_v2  ;;  %2929 = vmatprep.subr.bf16.mxu1 %v2928_v57 }
  0xb9   : > { %v2898_v15 = vpack.c.bf16 %v621_v6, %v620_v3  ;;  %v2930_v13 = vpack.c.bf16 %v723_v10, %v722_v8  ;;  %v545_v18 = vpop.xlane.xlu0 %544  ;;  %v592_v6 = vld [vmem:[%s4838_s3 + $0x40] sm:$0xff]  ;;  %v593_v10 = vld [vmem:[%s4838_s3 + $0x48] sm:$0xff] }
  0xba   : > { %v638_v20 = vmul.f32 %v606_v12, %v545_v18  ;;  %v740_v21 = vmul.f32 %v545_v18, %v545_v18  ;;  %v549_v50 = vpop.xlane.xlu1 %548 }
  0xbb   : > { %v639_v51 = vmul.f32 %v607_v14, %v549_v50  ;;  %v741_v25 = vmul.f32 %v549_v50, %v549_v50  ;;  %2899 = vmatpush3.bf16.msra.mxu0 %v2898_v15  ;;  %2931 = vmatpush3.bf16.msra.mxu1 %v2930_v13 }
  0xbd   : > { %v2900_v32 = vpack.c.bf16 %v639_v51, %v638_v20  ;;  %v2932_v54 = vpack.c.bf16 %v741_v25, %v740_v21  ;;  %v481_v55 = vpop.xlane.xlu0 %480  ;;  %v610_v51 = vld [vmem:[%s4838_s3 + $0xd0] sm:$0xff]  ;;  %v611_v25 = vld [vmem:[%s4838_s3 + $0xd8] sm:$0xff] }
  0xbe   : > { %v622_v41 = vmul.f32 %v590_v26, %v481_v55  ;;  %v724_v42 = vmul.f32 %v481_v55, %v481_v55  ;;  %v485_v36 = vpop.xlane.xlu1 %484 }
  0xbf   : > { %v623_v44 = vmul.f32 %v591_v28, %v485_v36  ;;  %v725_v61 = vmul.f32 %v485_v36, %v485_v36  ;;  %2901 = vmatprep.subr.bf16.mxu0 %v2900_v32  ;;  %2933 = vmatprep.subr.bf16.mxu1 %v2932_v54 }
  0xc1   : > { %v2902_v56 = vpack.c.bf16 %v623_v44, %v622_v41  ;;  %v2934_v1 = vpack.c.bf16 %v725_v61, %v724_v42  ;;  %v553_v2 = vpop.xlane.xlu0 %552  ;;  %v594_v44 = vld [vmem:[%s4838_s3 + $0x50] sm:$0xff]  ;;  %v595_v61 = vld [vmem:[%s4838_s3 + $0x58] sm:$0xff] }
  0xc2   : > { %v640_v57 = vmul.f32 %v608_v62, %v553_v2  ;;  %v742_v39 = vmul.f32 %v553_v2, %v553_v2  ;;  %v557_v3 = vpop.xlane.xlu1 %556 }
  0xc3   : > { %v641_v8 = vmul.f32 %v609_v52, %v557_v3  ;;  %v743_v46 = vmul.f32 %v557_v3, %v557_v3  ;;  %2903 = vmatpush3.bf16.msra.mxu0 %v2902_v56  ;;  %2935 = vmatpush3.bf16.msra.mxu1 %v2934_v1 }
  0xc5   : > { %v2904_v12 = vpack.c.bf16 %v641_v8, %v640_v57  ;;  %v2936_v14 = vpack.c.bf16 %v743_v46, %v742_v39  ;;  %v489_v15 = vpop.xlane.xlu0 %488  ;;  %v612_v8 = vld [vmem:[%s4838_s3 + $0xe0] sm:$0xff]  ;;  %v613_v46 = vld [vmem:[%s4838_s3 + $0xe8] sm:$0xff] }
  0xc6   : > { %v624_v13 = vmul.f32 %v592_v6, %v489_v15  ;;  %v726_v18 = vmul.f32 %v489_v15, %v489_v15  ;;  %v493_v20 = vpop.xlane.xlu1 %492 }
  0xc7   : > { %v625_v21 = vmul.f32 %v593_v10, %v493_v20  ;;  %v727_v50 = vmul.f32 %v493_v20, %v493_v20  ;;  %2905 = vmatprep.subr.bf16.mxu0 %v2904_v12  ;;  %2937 = vmatprep.subr.bf16.mxu1 %v2936_v14 }
  0xc9   : > { %v2906_v26 = vpack.c.bf16 %v625_v21, %v624_v13  ;;  %v2938_v28 = vpack.c.bf16 %v727_v50, %v726_v18  ;;  %v561_v32 = vpop.xlane.xlu0 %560  ;;  %v596_v21 = vld [vmem:[%s4838_s3 + $0x60] sm:$0xff]  ;;  %v597_v50 = vld [vmem:[%s4838_s3 + $0x68] sm:$0xff] }
  0xca   : > { %v642_v54 = vmul.f32 %v610_v51, %v561_v32  ;;  %v744_v55 = vmul.f32 %v561_v32, %v561_v32  ;;  %v565_v41 = vpop.xlane.xlu1 %564 }
  0xcb   : > { %v643_v42 = vmul.f32 %v611_v25, %v565_v41  ;;  %v745_v36 = vmul.f32 %v565_v41, %v565_v41  ;;  %2907 = vmatpush3.bf16.msra.mxu0 %v2906_v26  ;;  %2939 = vmatpush3.bf16.msra.mxu1 %v2938_v28 }
  0xcd   : > { %v2908_v62 = vpack.c.bf16 %v643_v42, %v642_v54  ;;  %v2940_v52 = vpack.c.bf16 %v745_v36, %v744_v55  ;;  %v497_v56 = vpop.xlane.xlu0 %496  ;;  %v614_v42 = vld [vmem:[%s4838_s3 + $0xf0] sm:$0xff]  ;;  %v615_v36 = vld [vmem:[%s4838_s3 + $0xf8] sm:$0xff] }
  0xce   : > { %v626_v1 = vmul.f32 %v594_v44, %v497_v56  ;;  %v728_v2 = vmul.f32 %v497_v56, %v497_v56  ;;  %v501_v57 = vpop.xlane.xlu1 %500 }
  0xcf   : > { %v627_v39 = vmul.f32 %v595_v61, %v501_v57  ;;  %v729_v3 = vmul.f32 %v501_v57, %v501_v57  ;;  %2909 = vmatprep.subr.bf16.mxu0 %v2908_v62  ;;  %2941 = vmatprep.subr.bf16.mxu1 %v2940_v52 }
  0xd1   : > { %v2910_v6 = vpack.c.bf16 %v627_v39, %v626_v1  ;;  %v2942_v10 = vpack.c.bf16 %v729_v3, %v728_v2  ;;  %v569_v12 = vpop.xlane.xlu0 %568  ;;  %v598_v39 = vld [vmem:[%s4838_s3 + $0x70] sm:$0xff]  ;;  %v599_v3 = vld [vmem:[%s4838_s3 + $0x78] sm:$0xff] }
  0xd2   : > { %v644_v14 = vmul.f32 %v612_v8, %v569_v12  ;;  %v746_v15 = vmul.f32 %v569_v12, %v569_v12  ;;  %v573_v13 = vpop.xlane.xlu1 %572 }
  0xd3   : > { %v645_v18 = vmul.f32 %v613_v46, %v573_v13  ;;  %v747_v20 = vmul.f32 %v573_v13, %v573_v13  ;;  %2911 = vmatpush3.bf16.msra.mxu0 %v2910_v6  ;;  %2943 = vmatpush3.bf16.msra.mxu1 %v2942_v10 }
  0xd5   : > { %v2912_v51 = vpack.c.bf16 %v645_v18, %v644_v14  ;;  %v2944_v25 = vpack.c.bf16 %v747_v20, %v746_v15  ;;  %v505_v26 = vpop.xlane.xlu0 %504 }
  0xd6   : > { %v628_v28 = vmul.f32 %v596_v21, %v505_v26  ;;  %v730_v32 = vmul.f32 %v505_v26, %v505_v26  ;;  %v509_v54 = vpop.xlane.xlu1 %508  ;;  %v582_v21 = vld [vmem:[%s4839_s4] sm:$0xff] }
  0xd7   : > { %v629_v55 = vmul.f32 %v597_v50, %v509_v54  ;;  %v731_v41 = vmul.f32 %v509_v54, %v509_v54  ;;  %2913 = vmatprep.subr.bf16.mxu0 %v2912_v51  ;;  %2945 = vmatprep.subr.bf16.mxu1 %v2944_v25  ;;  %v3204_v50 = vmov 0  }
  0xd8   : > { %3179 = vset.pattern.permute.xlu0 %v3204_v50  ;;  %v3205_v50 = vmov 1.0  }
  0xd9   : > { %v2914_v44 = vpack.c.bf16 %v629_v55, %v628_v28  ;;  %v2946_v61 = vpack.c.bf16 %v731_v41, %v730_v32  ;;  %v577_v62 = vpop.xlane.xlu0 %576 }
  0xda   : > { %v646_v52 = vmul.f32 %v614_v42, %v577_v62  ;;  %v748_v56 = vmul.f32 %v577_v62, %v577_v62  ;;  %v581_v1 = vpop.xlane.xlu1 %580 }
  0xdb   : > { %v647_v2 = vmul.f32 %v615_v36, %v581_v1  ;;  %v749_v57 = vmul.f32 %v581_v1, %v581_v1  ;;  %2915 = vmatpush3.bf16.msra.mxu0 %v2914_v44  ;;  %2947 = vmatpush3.bf16.msra.mxu1 %v2946_v61 }
  0xdd   : > { %v2916_v8 = vpack.c.bf16 %v647_v2, %v646_v52  ;;  %v2948_v46 = vpack.c.bf16 %v749_v57, %v748_v56  ;;  %v513_v6 = vpop.xlane.xlu0 %512  ;;  %v832_v52 = vlaneseq }
  0xde   : > { %v630_v10 = vmul.f32 %v598_v39, %v513_v6  ;;  %v732_v12 = vmul.f32 %v513_v6, %v513_v6  ;;  %v517_v14 = vpop.xlane.xlu1 %516 }
  0xdf   : > { %v631_v15 = vmul.f32 %v599_v3, %v517_v14  ;;  %v733_v13 = vmul.f32 %v517_v14, %v517_v14  ;;  %2917 = vmatprep.subr.bf16.mxu0 %v2916_v8  ;;  %2949 = vmatprep.subr.bf16.mxu1 %v2948_v46  ;;  %v833_v56 = vand.u32 127, %v832_v52  ;;  %v874_v52 = vld [vmem:[%s4840_s5 + $0x78] sm:$0xff] }
  0xe1   : > { %v2918_v18 = vpack.c.bf16 %v631_v15, %v630_v10  ;;  %v2950_v20 = vpack.c.bf16 %v733_v13, %v732_v12  ;;  %v859_v12 = vld [vmem:[%s4840_s5] sm:$0xff] }
  0xe3   : > { %2919 = vmatpush3.bf16.msra.mxu0 %v2918_v18  ;;  %2951 = vmatpush3.bf16.msra.mxu1 %v2950_v20 }
  0xe6   : > { %815 = vmatmul.mubr.f32.vlgmr.msra.gmra.mrb[0].mxu1 %v582_v21  ;;  %713 = vmatmul.mubr.f32.vlgmr.msra.gmra.mrb[0].mxu0 %v582_v21  ;;  %v860_v21 = vld [vmem:[%s4840_s5 + $0x8] sm:$0xff] }
  0xe7   : > { %2840 = vmatprep.mubr.msk.f32.mxu0 %vm891_vm4, %v859_v12  ;;  %v885_v12 = vld [vmem:[%s4840_s5 + $0xd0] sm:$0xff] }
 0x1b9   : > { %v2802_v51 = vpop.f32.mrb[0].mxu1  ;;  %v2767_v25 = vpop.f32.mrb[0].mxu0 }
 0x1ba   : > { %v2803_v26 = vpop.f32.mrb[1].mxu1  ;;  %v2768_v28 = vpop.f32.mrb[1].mxu0 }
 0x1bb   : > { %v2804_v32 = vadd.f32 %v2803_v26, %v2802_v51  ;;  %v2769_v54 = vadd.f32 %v2768_v28, %v2767_v25  ;;  %v861_v51 = vld [vmem:[%s4840_s5 + $0x10] sm:$0xff]  ;;  %v862_v25 = vld [vmem:[%s4840_s5 + $0x18] sm:$0xff]  ;;  %v863_v26 = vld [vmem:[%s4840_s5 + $0x20] sm:$0xff] }
 0x1bc   : > { %v864_v28 = vld [vmem:[%s4840_s5 + $0x28] sm:$0xff] }
 0x1bd   : > { %v820_v55 = vmul.f32 2.603082e-05, %v2804_v32  ;;  %v865_v32 = vld [vmem:[%s4840_s5 + $0x30] sm:$0xff] }
 0x1bf   : > { %v821_v41 = vmax.f32 %v820_v55, 1e-24  ;;  %v867_v55 = vld [vmem:[%s4840_s5 + $0x40] sm:$0xff] }
 0x1c1   : > { %3180 = vrsqrt.f32 %v821_v41  ;;  %v868_v41 = vld [vmem:[%s4840_s5 + $0x48] sm:$0xff] }
 0x1cb   : > { %v3181_v42 = vpop.eup %3180 }
 0x1cc   : > { %v823_v36 = vmul.f32 0.0051020407, %v3181_v42  ;;  %v869_v42 = vld [vmem:[%s4840_s5 + $0x50] sm:$0xff] }
 0x1ce   : > { %826 = vperm.xlu0 %3179, %v823_v36   ;;  %v870_v36 = vld [vmem:[%s4840_s5 + $0x58] sm:$0xff] }
 0x24d   : > { %v827_v44 = vpop.permute.xlu0 %826 }
 0x24e   : > { %v829_v61 = vmul.f32 %v2769_v54, %v827_v44  ;;  %v866_v54 = vld [vmem:[%s4840_s5 + $0x38] sm:$0xff]  ;;  %v871_v44 = vld [vmem:[%s4840_s5 + $0x60] sm:$0xff] }
 0x250   : > { %831 = vst.msk [vmem:[%s384_s11] sm:$0xff] %vm830_vm1, %v829_v61  ;;  %v834_v62 = vsel %vm830_vm1, %v829_v61, -inf }
 0x251   : > { %835 = vmax.xlane.f32.xlu1 %v834_v62  ;;  %v873_v62 = vld [vmem:[%s4840_s5 + $0x70] sm:$0xff] }
 0x2de   : > { %v836_v1 = vpop.xlane.xlu1 %835 }
 0x2df   : > { %vm837_vm2 = vcmp.eq.f32.partialorder %v829_v61, %v836_v1  ;;  %v872_v61 = vld [vmem:[%s4840_s5 + $0x68] sm:$0xff] }
 0x2e0   : > { %v838_v2 = vsel %vm837_vm2, %v833_v56, 7  ;;  %v876_v1 = vld [vmem:[%s4840_s5 + $0x88] sm:$0xff] }
 0x2e1   : > { %v839_v57 = vsel %vm830_vm1, %v838_v2, 2147483647  ;;  %v877_v2 = vld [vmem:[%s4840_s5 + $0x90] sm:$0xff] }
 0x2e2   : > { %v841_v39 = vshra.s32 %v839_v57, 16  ;;  %v840_v8 = vand.u32 65535, %v839_v57  ;;  %v878_v57 = vld [vmem:[%s4840_s5 + $0x98] sm:$0xff] }
 0x2e4   : > { %v843_v3 = vcvt.s32.f32 %v841_v39  ;;  %v842_v6 = vcvt.s32.f32 %v840_v8  ;;  %v879_v39 = vld [vmem:[%s4840_s5 + $0xa0] sm:$0xff]  ;;  %v881_v8 = vld [vmem:[%s4840_s5 + $0xb0] sm:$0xff] }
 0x2e6   : > { %844 = vmin.xlane.f32.xlu1 %v843_v3 }
 0x373   : > { %v845_v46 = vpop.xlane.xlu1 %844 }
 0x374   : > { %vm846_vm3 = vcmp.eq.f32.partialorder %v843_v3, %v845_v46  ;;  %v851_v14 = vcvt.f32.s32 %v845_v46  ;;  %v880_v3 = vld [vmem:[%s4840_s5 + $0xa8] sm:$0xff]  ;;  %v882_v46 = vld [vmem:[%s4840_s5 + $0xb8] sm:$0xff] }
 0x375   : > { %v847_v10 = vsel %vm846_vm3, %v842_v6, inf  ;;  %v883_v6 = vld [vmem:[%s4840_s5 + $0xc0] sm:$0xff] }
 0x376   : > { %848 = vmin.xlane.f32.xlu1 %v847_v10  ;;  %v852_v13 = vshll.u32 %v851_v14, 16  ;;  %v884_v10 = vld [vmem:[%s4840_s5 + $0xc8] sm:$0xff]  ;;  %v886_v14 = vld [vmem:[%s4840_s5 + $0xd8] sm:$0xff] }
 0x403   : > { %v849_v15 = vpop.xlane.xlu1 %848 }
 0x404   : > { %v850_v18 = vcvt.f32.s32 %v849_v15  ;;  %v887_v15 = vld [vmem:[%s4840_s5 + $0xe0] sm:$0xff] }
 0x406   : > { %v853_v20 = vadd.s32 %v852_v13, %v850_v18  ;;  %v888_v13 = vld [vmem:[%s4840_s5 + $0xe8] sm:$0xff]  ;;  %v889_v18 = vld [vmem:[%s4840_s5 + $0xf0] sm:$0xff] }
 0x408   : > { %855 = vst.msk [vmem:[%s388_s21] sm:$0xff] %vm854_vm5, %v853_v20  ;;  %vm856_vm6 = vcmp.eq.s32.totalorder %v833_v56, %v853_v20  ;;  %v875_v56 = vld [vmem:[%s4840_s5 + $0x80] sm:$0xff]  ;;  %v890_v20 = vld [vmem:[%s4840_s5 + $0xf8] sm:$0xff] }
 0x409   : > { %2838 = vmatprep.subr.msk.mxu0 %vm856_vm6, %v3205_v50 }
 0x40a   : > { %2839 = vmatpush3.msk.msra.mxu0 %vm856_vm6, %v3205_v50  ;;  %v1213_v50 = vld [vmem:[%s4841_s6] sm:$0x7f] }
 0x40b   : > { %2841 = vmatmul.mubr.msk.f32.vlgmr.msra.gmra.mrb[2].mxu0 %vm891_vm4, %v860_v21  ;;  %v1214_v21 = vld [vmem:[%s4841_s6 + $0x8] sm:$0x7f] }
 0x40c   : > { %2843 = vmatprep.mubr.msk.f32.mxu0 %vm891_vm4, %v861_v51  ;;  %2665 = vmatprep.subr.msk.mxu1 %vm1311_vm7, %v1214_v21  ;;  %v3206_v51 = vmov 0.0   ;;  %v3849_v21 = vpack.c.bf16 %v3443_v37, %v3440_v35  ;;  %v1724_v35 = vld [vmem:[%s4837_s2 + $0xa8] sm:$0xff]  ;;  %v1726_v37 = vld [vmem:[%s4837_s2 + $0xb8] sm:$0xff] }
 0x40d   : > { %2666 = vmatpush1.msk.msra.mxu1 %vm1311_vm7, %v1213_v50  ;;  %1382 = vmatprep.mubr.f32.mxu1 %v3206_v51 }
 0x40e   : > { %3072 = vmatprep.subr.bf16.mxu1 %v3299_v16 }
 0x40f   : > { %2844 = vmatmul.mubr.msk.f32.gmra.mrb[4].mxu0 %vm891_vm4, %v862_v25  ;;  %v1704_v25 = vld [vmem:[%s4837_s2 + $0x8] sm:$0xff] }
 0x410   : > { %2846 = vmatprep.mubr.msk.f32.mxu0 %vm891_vm4, %v863_v26  ;;  %v1706_v26 = vld [vmem:[%s4837_s2 + $0x18] sm:$0xff] }
 0x413   : > { %2847 = vmatmul.mubr.msk.f32.gmra.mrb[6].mxu0 %vm891_vm4, %v864_v28  ;;  %v1703_v28 = vld [vmem:[%s4837_s2] sm:$0xff] }
 0x414   : > { %2849 = vmatprep.mubr.msk.f32.mxu0 %vm891_vm4, %v865_v32  ;;  %v2952_v32 = vpack.c.bf16 %v1706_v26, %v1704_v25  ;;  %v1719_v26 = vld [vmem:[%s4837_s2 + $0x80] sm:$0xff] }
 0x416   : > { %2953 = vmatprep.subr.bf16.mxu0 %v2952_v32 }
 0x417   : > { %2850 = vmatmul.mubr.msk.f32.gmra.mrb[8].mxu0 %vm891_vm4, %v866_v54  ;;  %v1705_v54 = vld [vmem:[%s4837_s2 + $0x10] sm:$0xff] }
 0x418   : > { %2852 = vmatprep.mubr.msk.f32.mxu0 %vm891_vm4, %v867_v55  ;;  %v1708_v55 = vld [vmem:[%s4837_s2 + $0x28] sm:$0xff] }
 0x41b   : > { %2853 = vmatmul.mubr.msk.f32.gmra.mrb[10].mxu0 %vm891_vm4, %v868_v41  ;;  %v1710_v41 = vld [vmem:[%s4837_s2 + $0x38] sm:$0xff] }
 0x41c   : > { %2855 = vmatprep.mubr.msk.f32.mxu0 %vm891_vm4, %v869_v42 }
 0x41f   : > { %2856 = vmatmul.mubr.msk.f32.gmra.mrb[12].mxu0 %vm891_vm4, %v870_v36  ;;  %v2954_v36 = vpack.c.bf16 %v1705_v54, %v1703_v28  ;;  %v1721_v28 = vld [vmem:[%s4837_s2 + $0x90] sm:$0xff] }
 0x420   : > { %2858 = vmatprep.mubr.msk.f32.mxu0 %vm891_vm4, %v871_v44  ;;  %v2956_v44 = vpack.c.bf16 %v1710_v41, %v1708_v55  ;;  %v3871_v55 = vpack.c.bf16 %v3457_v40, %v3454_v59  ;;  %v2970_v41 = vpack.c.bf16 %v1721_v28, %v1719_v26  ;;  %v1728_v59 = vld [vmem:[%s4837_s2 + $0xc8] sm:$0xff]  ;;  %v1730_v40 = vld [vmem:[%s4837_s2 + $0xd8] sm:$0xff] }
 0x421   : > { %2955 = vmatpush1.bf16.msra.mxu0 %v2954_v36  ;;  %v1723_v36 = vld [vmem:[%s4837_s2 + $0xa0] sm:$0xff] }
 0x422   : > { %2957 = vmatprep.subr.bf16.mxu0 %v2956_v44  ;;  %v1725_v44 = vld [vmem:[%s4837_s2 + $0xb0] sm:$0xff] }
 0x423   : > { %2859 = vmatmul.mubr.msk.f32.gmra.mrb[14].mxu0 %vm891_vm4, %v872_v61  ;;  %v1707_v61 = vld [vmem:[%s4837_s2 + $0x20] sm:$0xff] }
 0x424   : > { %2861 = vmatprep.mubr.msk.f32.mxu0 %vm891_vm4, %v873_v62  ;;  %v1709_v62 = vld [vmem:[%s4837_s2 + $0x30] sm:$0xff] }
 0x427   : > { %2862 = vmatmul.mubr.msk.f32.gmra.mrb[16].mxu0 %vm891_vm4, %v874_v52  ;;  %v3803_v52 = vpack.c.bf16 %v3321_v33, %v3314_v29  ;;  %v1711_v29 = vld [vmem:[%s4837_s2 + $0x40] sm:$0xff]  ;;  %v1713_v33 = vld [vmem:[%s4837_s2 + $0x50] sm:$0xff] }
 0x428   : > { %2864 = vmatprep.mubr.msk.f32.mxu0 %vm891_vm4, %v875_v56 }
 0x42b   : > { %2865 = vmatmul.mubr.msk.f32.gmra.mrb[18].mxu0 %vm891_vm4, %v876_v1  ;;  %v1712_v1 = vld [vmem:[%s4837_s2 + $0x48] sm:$0xff] }
 0x42c   : > { %2867 = vmatprep.mubr.msk.f32.mxu0 %vm891_vm4, %v877_v2  ;;  %v1714_v2 = vld [vmem:[%s4837_s2 + $0x58] sm:$0xff] }
 0x42f   : > { %2868 = vmatmul.mubr.msk.f32.gmra.mrb[20].mxu0 %vm891_vm4, %v878_v57  ;;  %v2958_v57 = vpack.c.bf16 %v1709_v62, %v1707_v61 }
 0x430   : > { %2870 = vmatprep.mubr.msk.f32.mxu0 %vm891_vm4, %v879_v39 }
 0x431   : > { %2959 = vmatpush1.bf16.msra.mxu0 %v2958_v57  ;;  %v1727_v57 = vld [vmem:[%s4837_s2 + $0xc0] sm:$0xff] }
 0x433   : > { %2871 = vmatmul.mubr.msk.f32.gmra.mrb[22].mxu0 %vm891_vm4, %v880_v3  ;;  %v2960_v3 = vpack.c.bf16 %v1714_v2, %v1712_v1  ;;  %v2974_v1 = vpack.c.bf16 %v1725_v44, %v1723_v36  ;;  %v2976_v2 = vpack.c.bf16 %v1730_v40, %v1728_v59  ;;  %v1743_v59 = vld [vmem:[%s4837_s2 + $0x140] sm:$0xff]  ;;  %v1745_v40 = vld [vmem:[%s4837_s2 + $0x150] sm:$0xff] }
 0x434   : > { %2873 = vmatprep.mubr.msk.f32.mxu0 %vm891_vm4, %v881_v8  ;;  %v1716_v8 = vld [vmem:[%s4837_s2 + $0x68] sm:$0xff] }
 0x435   : > { %2961 = vmatprep.subr.bf16.mxu0 %v2960_v3  ;;  %v3917_v3 = vpack.c.bf16 %v3493_v48, %v3490_v45  ;;  %v1736_v45 = vld [vmem:[%s4837_s2 + $0x108] sm:$0xff]  ;;  %v1738_v48 = vld [vmem:[%s4837_s2 + $0x118] sm:$0xff] }
 0x437   : > { %2874 = vmatmul.mubr.msk.f32.gmra.mrb[24].mxu0 %vm891_vm4, %v882_v46  ;;  %v1718_v46 = vld [vmem:[%s4837_s2 + $0x78] sm:$0xff] }
 0x438   : > { %2876 = vmatprep.mubr.msk.f32.mxu0 %vm891_vm4, %v883_v6  ;;  %v3829_v6 = vpack.c.bf16 %v3375_v63, %v3366_v60  ;;  %v1720_v63 = vld [vmem:[%s4837_s2 + $0x88] sm:$0xff] }
 0x43b   : > { %2877 = vmatmul.mubr.msk.f32.gmra.mrb[26].mxu0 %vm891_vm4, %v884_v10 }
 0x43c   : > { %2879 = vmatprep.mubr.msk.f32.mxu0 %vm891_vm4, %v885_v12  ;;  %v2962_v12 = vpack.c.bf16 %v1713_v33, %v1711_v29  ;;  %v1729_v29 = vld [vmem:[%s4837_s2 + $0xd0] sm:$0xff] }
 0x43e   : > { %2963 = vmatpush1.bf16.msra.mxu0 %v2962_v12  ;;  %v1733_v12 = vld [vmem:[%s4837_s2 + $0xf0] sm:$0xff] }
 0x43f   : > { %2880 = vmatmul.mubr.msk.f32.gmra.mrb[28].mxu0 %vm891_vm4, %v886_v14  ;;  %v2964_v14 = vpack.c.bf16 %v1718_v46, %v1716_v8  ;;  %v2978_v8 = vpack.c.bf16 %v1729_v29, %v1727_v57  ;;  %v2994_v29 = vpack.c.bf16 %v1745_v40, %v1743_v59  ;;  %v3185_v59 = vld [vmem:[%s3281_s19 + $0x158] sm:$0xff] }
 0x440   : > { %2882 = vmatprep.mubr.msk.f32.mxu0 %vm891_vm4, %v887_v15  ;;  %v1715_v15 = vld [vmem:[%s4837_s2 + $0x60] sm:$0xff] }
 0x441   : > { %2965 = vmatprep.subr.bf16.mxu0 %v2964_v14 }
 0x443   : > { %2883 = vmatmul.mubr.msk.f32.gmra.mrb[30].mxu0 %vm891_vm4, %v888_v13  ;;  %v1717_v13 = vld [vmem:[%s4837_s2 + $0x70] sm:$0xff] }
 0x444   : > { %2885 = vmatprep.mubr.msk.f32.mxu0 %vm891_vm4, %v889_v18  ;;  %v1722_v18 = vld [vmem:[%s4837_s2 + $0x98] sm:$0xff]  ;;  %v2966_v50 = vpack.c.bf16 %v1717_v13, %v1715_v15  ;;  %v3941_v13 = vpack.c.bf16 %v3511_v7, %v3508_v47  ;;  %v1740_v47 = vld [vmem:[%s4837_s2 + $0x128] sm:$0xff] }
 0x445   : > { %v2968_v25 = vpack.c.bf16 %v1722_v18, %v1720_v63  ;;  %v2984_v63 = vpack.c.bf16 %v1738_v48, %v1736_v45  ;;  %v1735_v18 = vld [vmem:[%s4837_s2 + $0x100] sm:$0xff]  ;;  %v1742_v7 = vld [vmem:[%s4837_s2 + $0x138] sm:$0xff] }
 0x446   : > { %2967 = vmatpush1.bf16.msra.mxu0 %v2966_v50  ;;  %v2988_v28 = vpack.c.bf16 %v1742_v7, %v1740_v47 }
 0x447   : > { %2886 = vmatmul.mubr.msk.f32.gmra.mrb[32].mxu0 %vm891_vm4, %v890_v20  ;;  %2969 = vmatprep.subr.bf16.mxu0 %v2968_v25 }
 0x44a   : > { %2971 = vmatpush1.bf16.msra.mxu0 %v2970_v41  ;;  %v1746_v41 = vld [vmem:[%s4837_s2 + $0x158] sm:$0xff] }
 0x4de   : > { %v2842_v42 = vpop.f32.mrb[2].mxu0 }
 0x4df   : > { %v1054_v56 = vpop.f32.mrb[3].mxu0 }
 0x4e0   : > { %2667 = vmatmul.mubr.msk.f32.vlgmr.msra.gmra.mrb[2].mxu1 %vm830_vm1, %v1054_v56  ;;  %v3893_v56 = vpack.c.bf16 %v3475_v27, %v3472_v22  ;;  %v1732_v22 = vld [vmem:[%s4837_s2 + $0xe8] sm:$0xff]  ;;  %v1734_v27 = vld [vmem:[%s4837_s2 + $0xf8] sm:$0xff] }
 0x4e1   : > { %1388 = vmatprep.mubr.f32.mxu1 %v3206_v51  ;;  %3088 = vmatpush1.bf16.msra.mxu1 %v3301_v17  ;;  %v2980_v46 = vpack.c.bf16 %v1734_v27, %v1732_v22  ;;  %v1747_v27 = vld [vmem:[%s4837_s2 + $0x160] sm:$0xff] }
 0x4e2   : > { %v2845_v39 = vpop.f32.mrb[4].mxu0  ;;  %3073 = vmatprep.subr.bf16.mxu1 %v3803_v52 }
 0x4e3   : > { %v1064_v10 = vpop.f32.mrb[5].mxu0 }
 0x4e4   : > { %2668 = vmatmul.mubr.msk.f32.gmra.mrb[4].mxu1 %vm830_vm1, %v2842_v42  ;;  %v2972_v42 = vpack.c.bf16 %v1726_v37, %v1724_v35  ;;  %v1739_v35 = vld [vmem:[%s4837_s2 + $0x120] sm:$0xff]  ;;  %v1741_v37 = vld [vmem:[%s4837_s2 + $0x130] sm:$0xff] }
 0x4e5   : > { %1394 = vmatprep.mubr.f32.mxu1 %v3206_v51  ;;  %3089 = vmatpush1.bf16.msra.mxu1 %v3316_v30  ;;  %v2990_v36 = vpack.c.bf16 %v1741_v37, %v1739_v35 }
 0x4e6   : > { %v2848_v60 = vpop.f32.mrb[6].mxu0  ;;  %3074 = vmatprep.subr.bf16.mxu1 %v3829_v6  ;;  %2973 = vmatprep.subr.bf16.mxu0 %v2972_v42 }
 0x4e7   : > { %v1074_v20 = vpop.f32.mrb[7].mxu0  ;;  %2975 = vmatpush1.bf16.msra.mxu0 %v2974_v1 }
 0x4e8   : > { %2669 = vmatmul.mubr.msk.f32.gmra.mrb[6].mxu1 %vm830_vm1, %v1064_v10  ;;  %2977 = vmatprep.subr.bf16.mxu0 %v2976_v2  ;;  %v1731_v10 = vld [vmem:[%s4837_s2 + $0xe0] sm:$0xff]  ;;  %v1748_v2 = vld [vmem:[%s4837_s2 + $0x168] sm:$0xff] }
 0x4e9   : > { %1400 = vmatprep.mubr.f32.mxu1 %v3206_v51  ;;  %3090 = vmatpush1.bf16.msra.mxu1 %v3327_v38 }
 0x4ea   : > { %v3859_v32 = vpop.f32.mrb[8].mxu0  ;;  %3075 = vmatprep.subr.bf16.mxu1 %v3849_v21 }
 0x4eb   : > { %v1084_v54 = vpop.f32.mrb[9].mxu0  ;;  %2979 = vmatpush1.bf16.msra.mxu0 %v2978_v8  ;;  %v1749_v8 = vld [vmem:[%s4837_s2 + $0x170] sm:$0xff] }
 0x4ec   : > { %2670 = vmatmul.mubr.msk.f32.gmra.mrb[8].mxu1 %vm830_vm1, %v2845_v39  ;;  %2981 = vmatprep.subr.bf16.mxu0 %v2980_v46  ;;  %v2998_v45 = vpack.c.bf16 %v1749_v8, %v1747_v27  ;;  %v3190_v27 = vld [vmem:[%s3281_s19 + $0x1a8] sm:$0xff]  ;;  %v3191_v8 = vld [vmem:[%s3281_s19 + $0x1b8] sm:$0xff] }
 0x4ed   : > { %1406 = vmatprep.mubr.f32.mxu1 %v3206_v51  ;;  %3091 = vmatpush1.bf16.msra.mxu1 %v3341_v49 }
 0x4ee   : > { %v3881_v61 = vpop.f32.mrb[10].mxu0  ;;  %3076 = vmatprep.subr.bf16.mxu1 %v3871_v55 }
 0x4ef   : > { %v1094_v62 = vpop.f32.mrb[11].mxu0 }
 0x4f0   : > { %2671 = vmatmul.mubr.msk.f32.gmra.mrb[10].mxu1 %vm830_vm1, %v1074_v20  ;;  %v1737_v20 = vld [vmem:[%s4837_s2 + $0x110] sm:$0xff] }
 0x4f1   : > { %1412 = vmatprep.mubr.f32.mxu1 %v3206_v51  ;;  %3092 = vmatpush1.bf16.msra.mxu1 %v3362_v58  ;;  %v2986_v26 = vpack.c.bf16 %v1737_v20, %v1735_v18 }
 0x4f2   : > { %v3903_v33 = vpop.f32.mrb[12].mxu0  ;;  %3077 = vmatprep.subr.bf16.mxu1 %v3893_v56 }
 0x4f3   : > { %v3912_v39 = vpop.f32.mrb[13].mxu0 }
 0x4f4   : > { %2672 = vmatmul.mubr.msk.f32.gmra.mrb[12].mxu1 %vm830_vm1, %v2848_v60  ;;  %v2982_v60 = vpack.c.bf16 %v1733_v12, %v1731_v10  ;;  %v1752_v10 = vld [vmem:[%s4837_s2 + $0x188] sm:$0xff] }
 0x4f5   : > { %1418 = vmatprep.mubr.f32.mxu1 %v3206_v51  ;;  %3093 = vmatpush1.bf16.msra.mxu1 %v3389_v4 }
 0x4f6   : > { %v3927_v14 = vpop.f32.mrb[14].mxu0  ;;  %3078 = vmatprep.subr.bf16.mxu1 %v3917_v3  ;;  %2983 = vmatpush1.bf16.msra.mxu0 %v2982_v60  ;;  %v1751_v60 = vld [vmem:[%s4837_s2 + $0x180] sm:$0xff] }
 0x4f7   : > { %v3936_v15 = vpop.f32.mrb[15].mxu0  ;;  %2985 = vmatprep.subr.bf16.mxu0 %v2984_v63  ;;  %v1753_v63 = vld [vmem:[%s4837_s2 + $0x190] sm:$0xff] }
 0x4f8   : > { %2673 = vmatmul.mubr.msk.f32.gmra.mrb[14].mxu1 %vm830_vm1, %v1084_v54 }
 0x4f9   : > { %1424 = vmatprep.mubr.f32.mxu1 %v3206_v51  ;;  %3094 = vmatpush1.bf16.msra.mxu1 %v3415_v19 }
 0x4fa   : > { %v3951_v50 = vpop.f32.mrb[16].mxu0  ;;  %3079 = vmatprep.subr.bf16.mxu1 %v3941_v13  ;;  %2987 = vmatpush1.bf16.msra.mxu0 %v2986_v26 }
 0x4fb   : > { %v3960_v25 = vpop.f32.mrb[17].mxu0  ;;  %2989 = vmatprep.subr.bf16.mxu0 %v2988_v28 }
 0x4fc   : > { %2674 = vmatmul.mubr.msk.f32.gmra.mrb[16].mxu1 %vm830_vm1, %v3859_v32  ;;  %v1744_v32 = vld [vmem:[%s4837_s2 + $0x148] sm:$0xff] }
 0x4fd   : > { %1430 = vmatprep.mubr.f32.mxu1 %v3206_v51  ;;  %3095 = vmatpush1.bf16.msra.mxu1 %v3436_v31  ;;  %v2992_v44 = vpack.c.bf16 %v1746_v41, %v1744_v32  ;;  %v1757_v32 = vld [vmem:[%s4837_s2 + $0x1b0] sm:$0xff] }
 0x4fe   : > { %v3972_v54 = vpop.f32.mrb[18].mxu0  ;;  %3080 = vmatprep.subr.bf16.mxu1 %v3292_v9  ;;  %2991 = vmatpush1.bf16.msra.mxu0 %v2990_v36  ;;  %v3183_v36 = vld [vmem:[%s3281_s19 + $0x138] sm:$0xff] }
 0x4ff   : > { %v1134_v42 = vpop.f32.mrb[19].mxu0  ;;  %2993 = vmatprep.subr.bf16.mxu0 %v2992_v44 }
 0x500   : > { %2675 = vmatmul.mubr.msk.f32.gmra.mrb[18].mxu1 %vm830_vm1, %v1094_v62  ;;  %v1750_v62 = vld [vmem:[%s4837_s2 + $0x178] sm:$0xff] }
 0x501   : > { %1436 = vmatprep.mubr.f32.mxu1 %v3206_v51  ;;  %3096 = vmatpush1.bf16.msra.mxu1 %v3288_v5  ;;  %v2996_v22 = vpack.c.bf16 %v1750_v62, %v1748_v2  ;;  %v3187_v2 = vld [vmem:[%s3281_s19 + $0x178] sm:$0xff] }
 0x502   : > { %v2869_v1 = vpop.f32.mrb[20].mxu0  ;;  %2995 = vmatpush1.bf16.msra.mxu0 %v2994_v29  ;;  %v3189_v29 = vld [vmem:[%s3281_s19 + $0x198] sm:$0xff] }
 0x503   : > { %v1144_v57 = vpop.f32.mrb[21].mxu0  ;;  %2997 = vmatprep.subr.bf16.mxu0 %v2996_v22 }
 0x504   : > { %2676 = vmatmul.mubr.msk.f32.gmra.mrb[20].mxu1 %vm830_vm1, %v3881_v61  ;;  %v1754_v61 = vld [vmem:[%s4837_s2 + $0x198] sm:$0xff] }
 0x505   : > { %1442 = vmatprep.mubr.f32.mxu1 %v3206_v51  ;;  %v3000_v48 = vpack.c.bf16 %v1754_v61, %v1752_v10  ;;  %v3192_v10 = vld [vmem:[%s3281_s19 + $0x1c8] sm:$0xff]  ;;  %v3193_v61 = vld [vmem:[%s3281_s19 + $0x1d8] sm:$0xff] }
 0x506   : > { %v2872_v46 = vpop.f32.mrb[22].mxu0  ;;  %2999 = vmatpush1.bf16.msra.mxu0 %v2998_v45  ;;  %v3194_v45 = vld [vmem:[%s3281_s19 + $0x1e8] sm:$0xff] }
 0x507   : > { %v1154_v12 = vpop.f32.mrb[23].mxu0  ;;  %3001 = vmatprep.subr.bf16.mxu0 %v3000_v48  ;;  %v3195_v48 = vld [vmem:[%s3281_s19 + $0x1f8] sm:$0xff] }
 0x508   : > { %2677 = vmatmul.mubr.msk.f32.gmra.mrb[22].mxu1 %vm830_vm1, %v3912_v39  ;;  %v3002_v39 = vpack.c.bf16 %v1753_v63, %v1751_v60  ;;  %v4126_v60 = vpack.c.bf16 %v3195_v48, %v3194_v45  ;;  %v2130_v63 = vld [vmem:[%s4836_s1 + $0x88] sm:$0xff]  ;;  %v2159_v45 = vld [vmem:[%s4836_s1 + $0x170] sm:$0xff] }
 0x509   : > { %1448 = vmatprep.mubr.f32.mxu1 %v3206_v51  ;;  %v2162_v48 = vld [vmem:[%s4836_s1 + $0x188] sm:$0xff] }
 0x50a   : > { %v2875_v18 = vpop.f32.mrb[24].mxu0  ;;  %3003 = vmatpush1.bf16.msra.mxu0 %v3002_v39  ;;  %v2134_v39 = vld [vmem:[%s4836_s1 + $0xa8] sm:$0xff] }
 0x50b   : > { %v1164_v20 = vpop.f32.mrb[25].mxu0 }
 0x50c   : > { %2678 = vmatmul.mubr.msk.f32.gmra.mrb[24].mxu1 %vm830_vm1, %v3903_v33 }
 0x50d   : > { %1454 = vmatprep.mubr.f32.mxu1 %v3206_v51 }
 0x50e   : > { %v2878_v47 = vpop.f32.mrb[26].mxu0 }
 0x50f   : > { %v1174_v7 = vpop.f32.mrb[27].mxu0 }
 0x510   : > { %2679 = vmatmul.mubr.msk.f32.gmra.mrb[26].mxu1 %vm830_vm1, %v3936_v15 }
 0x511   : > { %1460 = vmatprep.mubr.f32.mxu1 %v3206_v51 }
 0x512   : > { %v4027_v26 = vpop.f32.mrb[28].mxu0 }
 0x513   : > { %v1184_v28 = vpop.f32.mrb[29].mxu0 }
 0x514   : > { %2680 = vmatmul.mubr.msk.f32.gmra.mrb[28].mxu1 %vm830_vm1, %v3927_v14  ;;  %v1756_v14 = vld [vmem:[%s4837_s2 + $0x1a8] sm:$0xff] }
 0x515   : > { %1466 = vmatprep.mubr.f32.mxu1 %v3206_v51 }
 0x516   : > { %v4032_v33 = vpop.f32.mrb[30].mxu0 }
 0x517   : > { %v4034_v35 = vpop.f32.mrb[31].mxu0 }
 0x518   : > { %2681 = vmatmul.mubr.msk.f32.gmra.mrb[30].mxu1 %vm830_vm1, %v3960_v25 }
 0x519   : > { %1472 = vmatprep.mubr.f32.mxu1 %v3206_v51 }
 0x51a   : > { %v4039_v15 = vpop.f32.mrb[32].mxu0 }
 0x51b   : > { %v4041_v37 = vpop.f32.mrb[33].mxu0 }
 0x51c   : > { %2682 = vmatmul.mubr.msk.f32.gmra.mrb[32].mxu1 %vm830_vm1, %v3951_v50  ;;  %v1758_v50 = vld [vmem:[%s4837_s2 + $0x1b8] sm:$0xff] }
 0x51d   : > { %1478 = vmatprep.mubr.f32.mxu1 %v3206_v51  ;;  %v3004_v25 = vpack.c.bf16 %v1758_v50, %v1756_v14  ;;  %v2141_v14 = vld [vmem:[%s4836_s1 + $0xe0] sm:$0xff]  ;;  %v2144_v50 = vld [vmem:[%s4836_s1 + $0xf8] sm:$0xff] }
 0x51f   : > { %3005 = vmatprep.subr.bf16.mxu0 %v3004_v25  ;;  %v2143_v25 = vld [vmem:[%s4836_s1 + $0xf0] sm:$0xff] }
 0x520   : > { %2683 = vmatmul.mubr.msk.f32.gmra.mrb[34].mxu1 %vm830_vm1, %v1134_v42  ;;  %v3182_v42 = vld [vmem:[%s3281_s19 + $0x128] sm:$0xff] }
 0x521   : > { %1484 = vmatprep.mubr.f32.mxu1 %v3206_v51  ;;  %v4076_v44 = vpack.c.bf16 %v3183_v36, %v3182_v42  ;;  %v2147_v42 = vld [vmem:[%s4836_s1 + $0x110] sm:$0xff]  ;;  %v2150_v36 = vld [vmem:[%s4836_s1 + $0x128] sm:$0xff] }
 0x523   : > { %3081 = vmatprep.subr.bf16.mxu1 %v4076_v44 }
 0x524   : > { %2684 = vmatmul.mubr.msk.f32.gmra.mrb[36].mxu1 %vm830_vm1, %v3972_v54  ;;  %v1755_v54 = vld [vmem:[%s4837_s2 + $0x1a0] sm:$0xff] }
 0x525   : > { %1490 = vmatprep.mubr.f32.mxu1 %v3206_v51  ;;  %v3006_v41 = vpack.c.bf16 %v1757_v32, %v1755_v54  ;;  %3097 = vmatpush1.bf16.msra.mxu1 %v3307_v23  ;;  %v2146_v54 = vld [vmem:[%s4836_s1 + $0x108] sm:$0xff]  ;;  %v2145_v32 = vld [vmem:[%s4836_s1 + $0x100] sm:$0xff] }
 0x527   : > { %3007 = vmatpush1.bf16.msra.mxu0 %v3006_v41  ;;  %v2148_v41 = vld [vmem:[%s4836_s1 + $0x118] sm:$0xff] }
 0x528   : > { %2685 = vmatmul.mubr.msk.f32.gmra.mrb[38].mxu1 %vm830_vm1, %v1144_v57  ;;  %3009 = vmatprep.subr.bf16.mxu0 %v3299_v16  ;;  %v3184_v16 = vld [vmem:[%s3281_s19 + $0x148] sm:$0xff] }
 0x529   : > { %1496 = vmatprep.mubr.f32.mxu1 %v3206_v51  ;;  %v4084_v40 = vpack.c.bf16 %v3185_v59, %v3184_v16  ;;  %v3188_v57 = vld [vmem:[%s3281_s19 + $0x188] sm:$0xff]  ;;  %v2149_v16 = vld [vmem:[%s4836_s1 + $0x120] sm:$0xff]  ;;  %v2152_v59 = vld [vmem:[%s4836_s1 + $0x138] sm:$0xff] }
 0x52a   : > { %v4100_v22 = vpack.c.bf16 %v3189_v29, %v3188_v57  ;;  %v2153_v57 = vld [vmem:[%s4836_s1 + $0x140] sm:$0xff]  ;;  %v2156_v29 = vld [vmem:[%s4836_s1 + $0x158] sm:$0xff] }
 0x52b   : > { %3082 = vmatprep.subr.bf16.mxu1 %v4084_v40 }
 0x52c   : > { %2686 = vmatmul.mubr.msk.f32.gmra.mrb[40].mxu1 %vm830_vm1, %v2869_v1  ;;  %v3186_v1 = vld [vmem:[%s3281_s19 + $0x168] sm:$0xff] }
 0x52d   : > { %1502 = vmatprep.mubr.f32.mxu1 %v3206_v51  ;;  %3098 = vmatpush1.bf16.msra.mxu1 %v3323_v34  ;;  %v4092_v62 = vpack.c.bf16 %v3187_v2, %v3186_v1  ;;  %v2151_v1 = vld [vmem:[%s4836_s1 + $0x130] sm:$0xff]  ;;  %v2154_v2 = vld [vmem:[%s4836_s1 + $0x148] sm:$0xff] }
 0x52f   : > { %3083 = vmatprep.subr.bf16.mxu1 %v4092_v62 }
 0x530   : > { %2687 = vmatmul.mubr.msk.f32.gmra.mrb[42].mxu1 %vm830_vm1, %v1154_v12  ;;  %v4117_v12 = vpack.c.bf16 %v3193_v61, %v3192_v10  ;;  %v2157_v10 = vld [vmem:[%s4836_s1 + $0x160] sm:$0xff]  ;;  %v2160_v61 = vld [vmem:[%s4836_s1 + $0x178] sm:$0xff] }
 0x531   : > { %1508 = vmatprep.mubr.f32.mxu1 %v3206_v51  ;;  %3099 = vmatpush1.bf16.msra.mxu1 %v3333_v43 }
 0x532   : > { %3084 = vmatprep.subr.bf16.mxu1 %v4100_v22 }
 0x534   : > { %2688 = vmatmul.mubr.msk.f32.gmra.mrb[44].mxu1 %vm830_vm1, %v2872_v46  ;;  %v4108_v46 = vpack.c.bf16 %v3191_v8, %v3190_v27  ;;  %v2155_v27 = vld [vmem:[%s4836_s1 + $0x150] sm:$0xff]  ;;  %v2158_v8 = vld [vmem:[%s4836_s1 + $0x168] sm:$0xff] }
 0x535   : > { %1514 = vmatprep.mubr.f32.mxu1 %v3206_v51  ;;  %3100 = vmatpush1.bf16.msra.mxu1 %v3351_v53 }
 0x536   : > { %3085 = vmatprep.subr.bf16.mxu1 %v4108_v46 }
 0x538   : > { %2689 = vmatmul.mubr.msk.f32.gmra.mrb[46].mxu1 %vm830_vm1, %v1164_v20  ;;  %v2132_v20 = vld [vmem:[%s4836_s1 + $0x98] sm:$0xff] }
 0x539   : > { %1520 = vmatprep.mubr.f32.mxu1 %v3206_v51  ;;  %3101 = vmatpush1.bf16.msra.mxu1 %v3379_v0 }
 0x53a   : > { %3086 = vmatprep.subr.bf16.mxu1 %v4117_v12 }
 0x53c   : > { %2690 = vmatmul.mubr.msk.f32.gmra.mrb[48].mxu1 %vm830_vm1, %v2875_v18  ;;  %v2129_v18 = vld [vmem:[%s4836_s1 + $0x80] sm:$0xff] }
 0x53d   : > { %1526 = vmatprep.mubr.f32.mxu1 %v3206_v51  ;;  %3102 = vmatpush1.bf16.msra.mxu1 %v3401_v11 }
 0x53e   : > { %3087 = vmatprep.subr.bf16.mxu1 %v4126_v60 }
 0x540   : > { %2691 = vmatmul.mubr.msk.f32.gmra.mrb[50].mxu1 %vm830_vm1, %v1174_v7  ;;  %v2136_v7 = vld [vmem:[%s4836_s1 + $0xb8] sm:$0xff] }
 0x541   : > { %1532 = vmatprep.mubr.f32.mxu1 %v3206_v51  ;;  %3103 = vmatpush1.bf16.msra.mxu1 %v3425_v24 }
 0x544   : > { %2692 = vmatmul.mubr.msk.f32.gmra.mrb[52].mxu1 %vm830_vm1, %v2878_v47  ;;  %v2133_v47 = vld [vmem:[%s4836_s1 + $0xa0] sm:$0xff] }
 0x545   : > { %1538 = vmatprep.mubr.f32.mxu1 %v3206_v51 }
 0x548   : > { %2693 = vmatmul.mubr.msk.f32.gmra.mrb[54].mxu1 %vm830_vm1, %v1184_v28  ;;  %v2138_v28 = vld [vmem:[%s4836_s1 + $0xc8] sm:$0xff] }
 0x549   : > { %1544 = vmatprep.mubr.f32.mxu1 %v3206_v51 }
 0x54c   : > { %2694 = vmatmul.mubr.msk.f32.gmra.mrb[56].mxu1 %vm830_vm1, %v4027_v26  ;;  %v2135_v26 = vld [vmem:[%s4836_s1 + $0xb0] sm:$0xff] }
 0x54d   : > { %1550 = vmatprep.mubr.f32.mxu1 %v3206_v51 }
 0x550   : > { %2695 = vmatmul.mubr.msk.f32.gmra.mrb[58].mxu1 %vm830_vm1, %v4034_v35  ;;  %v2140_v35 = vld [vmem:[%s4836_s1 + $0xd8] sm:$0xff] }
 0x551   : > { %1556 = vmatprep.mubr.f32.mxu1 %v3206_v51 }
 0x554   : > { %2696 = vmatmul.mubr.msk.f32.gmra.mrb[60].mxu1 %vm830_vm1, %v4032_v33  ;;  %v2137_v33 = vld [vmem:[%s4836_s1 + $0xc0] sm:$0xff] }
 0x555   : > { %1562 = vmatprep.mubr.f32.mxu1 %v3206_v51 }
 0x558   : > { %2697 = vmatmul.mubr.msk.f32.gmra.mrb[62].mxu1 %vm830_vm1, %v4041_v37  ;;  %v2142_v37 = vld [vmem:[%s4836_s1 + $0xe8] sm:$0xff] }
 0x559   : > { %1568 = vmatprep.mubr.f32.mxu1 %v3206_v51  ;;  %v2131_v51 = vld [vmem:[%s4836_s1 + $0x90] sm:$0xff] }
 0x55c   : > { %2698 = vmatmul.mubr.msk.f32.gmra.mrb[64].mxu1 %vm830_vm1, %v4039_v15  ;;  %v2139_v15 = vld [vmem:[%s4836_s1 + $0xd0] sm:$0xff] }
 0x55d   : > { %2289 = vmatprep.mubr.f32.mxu1 %v2130_v63  ;;  %v2161_v63 = vld [vmem:[%s4836_s1 + $0x180] sm:$0xff] }
 0x560   : > { %2290 = vmatmul.mubr.f32.vlgmr.msra.gmra.mrb[66].mxu1 %v2129_v18  ;;  %v2164_v18 = vld [vmem:[%s4836_s1 + $0x198] sm:$0xff] }
 0x561   : > { %2295 = vmatprep.mubr.f32.mxu1 %v2132_v20  ;;  %v2163_v20 = vld [vmem:[%s4836_s1 + $0x190] sm:$0xff] }
 0x564   : > { %2296 = vmatmul.mubr.f32.gmra.mrb[68].mxu1 %v2131_v51  ;;  %v2166_v51 = vld [vmem:[%s4836_s1 + $0x1a8] sm:$0xff] }
 0x565   : > { %2301 = vmatprep.mubr.f32.mxu1 %v2134_v39  ;;  %v2165_v39 = vld [vmem:[%s4836_s1 + $0x1a0] sm:$0xff] }
 0x568   : > { %2302 = vmatmul.mubr.f32.gmra.mrb[70].mxu1 %v2133_v47  ;;  %v2168_v47 = vld [vmem:[%s4836_s1 + $0x1b8] sm:$0xff] }
 0x569   : > { %2307 = vmatprep.mubr.f32.mxu1 %v2136_v7  ;;  %v2167_v7 = vld [vmem:[%s4836_s1 + $0x1b0] sm:$0xff] }
 0x56c   : > { %2308 = vmatmul.mubr.f32.gmra.mrb[72].mxu1 %v2135_v26  ;;  %v2170_v26 = vld [vmem:[%s4836_s1 + $0x1c8] sm:$0xff] }
 0x56d   : > { %2313 = vmatprep.mubr.f32.mxu1 %v2138_v28  ;;  %v2169_v28 = vld [vmem:[%s4836_s1 + $0x1c0] sm:$0xff] }
 0x570   : > { %2314 = vmatmul.mubr.f32.gmra.mrb[74].mxu1 %v2137_v33  ;;  %v2172_v33 = vld [vmem:[%s4836_s1 + $0x1d8] sm:$0xff] }
 0x571   : > { %2319 = vmatprep.mubr.f32.mxu1 %v2140_v35  ;;  %v2171_v35 = vld [vmem:[%s4836_s1 + $0x1d0] sm:$0xff] }
 0x574   : > { %2320 = vmatmul.mubr.f32.gmra.mrb[76].mxu1 %v2139_v15  ;;  %v1576_v15 = vld [vmem:[%s4842_s7 + $0x8] sm:$0xff] }
 0x575   : > { %2325 = vmatprep.mubr.f32.mxu1 %v2142_v37  ;;  %v2174_v37 = vld [vmem:[%s4836_s1 + $0x1e8] sm:$0xff] }
 0x578   : > { %2326 = vmatmul.mubr.f32.gmra.mrb[78].mxu1 %v2141_v14 }
 0x579   : > { %2331 = vmatprep.mubr.f32.mxu1 %v2144_v50  ;;  %v1575_v50 = vld [vmem:[%s4842_s7] sm:$0xff] }
 0x57c   : > { %2332 = vmatmul.mubr.f32.gmra.mrb[80].mxu1 %v2143_v25 }
 0x57d   : > { %2337 = vmatprep.mubr.f32.mxu1 %v2146_v54 }
 0x580   : > { %2338 = vmatmul.mubr.f32.gmra.mrb[82].mxu1 %v2145_v32  ;;  %v2173_v32 = vld [vmem:[%s4836_s1 + $0x1e0] sm:$0xff] }
 0x581   : > { %2343 = vmatprep.mubr.f32.mxu1 %v2148_v41 }
 0x584   : > { %2344 = vmatmul.mubr.f32.gmra.mrb[84].mxu1 %v2147_v42  ;;  %v1578_v42 = vld [vmem:[%s4842_s7 + $0x18] sm:$0xff] }
 0x585   : > { %2349 = vmatprep.mubr.f32.mxu1 %v2150_v36  ;;  %v2176_v36 = vld [vmem:[%s4836_s1 + $0x1f8] sm:$0xff] }
 0x588   : > { %2350 = vmatmul.mubr.f32.gmra.mrb[86].mxu1 %v2149_v16 }
 0x589   : > { %2355 = vmatprep.mubr.f32.mxu1 %v2152_v59  ;;  %v1577_v59 = vld [vmem:[%s4842_s7 + $0x10] sm:$0xff] }
 0x58c   : > { %2356 = vmatmul.mubr.f32.gmra.mrb[88].mxu1 %v2151_v1 }
 0x58d   : > { %2361 = vmatprep.mubr.f32.mxu1 %v2154_v2 }
 0x590   : > { %2362 = vmatmul.mubr.f32.gmra.mrb[90].mxu1 %v2153_v57  ;;  %v2175_v57 = vld [vmem:[%s4836_s1 + $0x1f0] sm:$0xff] }
 0x591   : > { %2367 = vmatprep.mubr.f32.mxu1 %v2156_v29 }
 0x594   : > { %2368 = vmatmul.mubr.f32.gmra.mrb[92].mxu1 %v2155_v27  ;;  %v1580_v27 = vld [vmem:[%s4842_s7 + $0x28] sm:$0xff] }
 0x595   : > { %2373 = vmatprep.mubr.f32.mxu1 %v2158_v8 }
 0x598   : > { %2374 = vmatmul.mubr.f32.gmra.mrb[94].mxu1 %v2157_v10  ;;  %v1579_v10 = vld [vmem:[%s4842_s7 + $0x20] sm:$0xff] }
 0x599   : > { %2379 = vmatprep.mubr.f32.mxu1 %v2160_v61 }
 0x59c   : > { %2380 = vmatmul.mubr.f32.gmra.mrb[96].mxu1 %v2159_v45 }
 0x59d   : > { %2385 = vmatprep.mubr.f32.mxu1 %v2162_v48  ;;  %v1582_v48 = vld [vmem:[%s4842_s7 + $0x38] sm:$0xff] }
 0x5a0   : > { %2386 = vmatmul.mubr.f32.gmra.mrb[98].mxu1 %v2161_v63  ;;  %v1581_v63 = vld [vmem:[%s4842_s7 + $0x30] sm:$0xff] }
 0x5a1   : > { %2391 = vmatprep.mubr.f32.mxu1 %v2164_v18 }
 0x5a4   : > { %2392 = vmatmul.mubr.f32.gmra.mrb[100].mxu1 %v2163_v20 }
 0x5a5   : > { %2397 = vmatprep.mubr.f32.mxu1 %v2166_v51  ;;  %v1584_v51 = vld [vmem:[%s4842_s7 + $0x48] sm:$0xff] }
 0x5a8   : > { %2398 = vmatmul.mubr.f32.gmra.mrb[102].mxu1 %v2165_v39  ;;  %v1583_v39 = vld [vmem:[%s4842_s7 + $0x40] sm:$0xff] }
 0x5a9   : > { %2403 = vmatprep.mubr.f32.mxu1 %v2168_v47 }
 0x5ac   : > { %2404 = vmatmul.mubr.f32.gmra.mrb[104].mxu1 %v2167_v7 }
 0x5ad   : > { %2409 = vmatprep.mubr.f32.mxu1 %v2170_v26  ;;  %v1586_v26 = vld [vmem:[%s4842_s7 + $0x58] sm:$0xff] }
 0x5b0   : > { %2410 = vmatmul.mubr.f32.gmra.mrb[106].mxu1 %v2169_v28  ;;  %v1585_v28 = vld [vmem:[%s4842_s7 + $0x50] sm:$0xff] }
 0x5b1   : > { %2415 = vmatprep.mubr.f32.mxu1 %v2172_v33 }
 0x5b3   : > { %v1384_v14 = vpop.f32.mrb[2].mxu1 }
 0x5b4   : > { %v1386_v25 = vpop.f32.mrb[3].mxu1  ;;  %2416 = vmatmul.mubr.f32.gmra.mrb[108].mxu1 %v2171_v35  ;;  %v1639_v41 = vmul.f32 %v1575_v50, %v1384_v14 }
 0x5b5   : > { %v1640_v54 = vmul.f32 %v1576_v15, %v1386_v25  ;;  %2421 = vmatprep.mubr.f32.mxu1 %v2174_v37  ;;  %v1588_v15 = vld [vmem:[%s4842_s7 + $0x68] sm:$0xff]  ;;  %v1587_v37 = vld [vmem:[%s4842_s7 + $0x60] sm:$0xff]  ;;  %v1590_v25 = vld [vmem:[%s4842_s7 + $0x78] sm:$0xff] }
 0x5b7   : > { %v1390_v16 = vpop.f32.mrb[4].mxu1  ;;  %2699 = vmatprep.mubr.msk.f32.mxu0 %vm1759_vm8, %v1640_v54  ;;  %v1589_v54 = vld [vmem:[%s4842_s7 + $0x70] sm:$0xff] }
 0x5b8   : > { %v1392_v1 = vpop.f32.mrb[5].mxu1  ;;  %1921 = vmatmul.mubr.f32.vlgmr.msra.gmra.mrb[34].mxu0 %v1639_v41  ;;  %2422 = vmatmul.mubr.f32.gmra.mrb[110].mxu1 %v2173_v32  ;;  %v1641_v29 = vmul.f32 %v1577_v59, %v1390_v16 }
 0x5b9   : > { %v1642_v2 = vmul.f32 %v1578_v42, %v1392_v1  ;;  %3011 = vmatpush1.bf16.msra.mxu0 %v3301_v17  ;;  %2427 = vmatprep.mubr.f32.mxu1 %v2176_v36  ;;  %v1592_v42 = vld [vmem:[%s4842_s7 + $0x88] sm:$0xff]  ;;  %v1591_v36 = vld [vmem:[%s4842_s7 + $0x80] sm:$0xff]  ;;  %v1594_v1 = vld [vmem:[%s4842_s7 + $0x98] sm:$0xff] }
 0x5ba   : > { %3013 = vmatprep.subr.bf16.mxu0 %v3803_v52 }
 0x5bb   : > { %v1396_v8 = vpop.f32.mrb[6].mxu1  ;;  %2700 = vmatprep.mubr.msk.f32.mxu0 %vm1759_vm8, %v1642_v2  ;;  %v1593_v2 = vld [vmem:[%s4842_s7 + $0x90] sm:$0xff] }
 0x5bc   : > { %v1398_v17 = vpop.f32.mrb[7].mxu1  ;;  %1927 = vmatmul.mubr.f32.gmra.mrb[36].mxu0 %v1641_v29  ;;  %2428 = vmatmul.mubr.f32.gmra.mrb[112].mxu1 %v2175_v57  ;;  %v1643_v45 = vmul.f32 %v1579_v10, %v1396_v8  ;;  %v1595_v8 = vld [vmem:[%s4842_s7 + $0xa0] sm:$0xff] }
 0x5bd   : > { %v1644_v61 = vmul.f32 %v1580_v27, %v1398_v17  ;;  %3015 = vmatpush1.bf16.msra.mxu0 %v3316_v30  ;;  %v1596_v27 = vld [vmem:[%s4842_s7 + $0xa8] sm:$0xff] }
 0x5be   : > { %3017 = vmatprep.subr.bf16.mxu0 %v3829_v6 }
 0x5bf   : > { %v1402_v52 = vpop.f32.mrb[8].mxu1  ;;  %2701 = vmatprep.mubr.msk.f32.mxu0 %vm1759_vm8, %v1644_v61  ;;  %v1598_v61 = vld [vmem:[%s4842_s7 + $0xb8] sm:$0xff] }
 0x5c0   : > { %v1404_v18 = vpop.f32.mrb[9].mxu1  ;;  %1933 = vmatmul.mubr.f32.gmra.mrb[38].mxu0 %v1643_v45  ;;  %v1645_v30 = vmul.f32 %v1581_v63, %v1402_v52  ;;  %v1597_v45 = vld [vmem:[%s4842_s7 + $0xb0] sm:$0xff]  ;;  %v1600_v63 = vld [vmem:[%s4842_s7 + $0xc8] sm:$0xff] }
 0x5c1   : > { %v1646_v20 = vmul.f32 %v1582_v48, %v1404_v18  ;;  %3019 = vmatpush1.bf16.msra.mxu0 %v3327_v38  ;;  %v1599_v18 = vld [vmem:[%s4842_s7 + $0xc0] sm:$0xff] }
 0x5c2   : > { %3021 = vmatprep.subr.bf16.mxu0 %v3849_v21 }
 0x5c3   : > { %v1408_v6 = vpop.f32.mrb[10].mxu1  ;;  %2702 = vmatprep.mubr.msk.f32.mxu0 %vm1759_vm8, %v1646_v20 }
 0x5c4   : > { %v1410_v47 = vpop.f32.mrb[11].mxu1  ;;  %1939 = vmatmul.mubr.f32.gmra.mrb[40].mxu0 %v1645_v30  ;;  %v1647_v38 = vmul.f32 %v1583_v39, %v1408_v6  ;;  %v1601_v6 = vld [vmem:[%s4842_s7 + $0xd0] sm:$0xff] }
 0x5c5   : > { %v1648_v7 = vmul.f32 %v1584_v51, %v1410_v47  ;;  %3023 = vmatpush1.bf16.msra.mxu0 %v3341_v49  ;;  %v1602_v51 = vld [vmem:[%s4842_s7 + $0xd8] sm:$0xff] }
 0x5c6   : > { %3025 = vmatprep.subr.bf16.mxu0 %v3871_v55 }
 0x5c7   : > { %v1414_v21 = vpop.f32.mrb[12].mxu1  ;;  %2703 = vmatprep.mubr.msk.f32.mxu0 %vm1759_vm8, %v1648_v7  ;;  %v1604_v7 = vld [vmem:[%s4842_s7 + $0xe8] sm:$0xff] }
 0x5c8   : > { %v1416_v33 = vpop.f32.mrb[13].mxu1  ;;  %1945 = vmatmul.mubr.f32.gmra.mrb[42].mxu0 %v1647_v38  ;;  %v1649_v49 = vmul.f32 %v1585_v28, %v1414_v21  ;;  %v1603_v38 = vld [vmem:[%s4842_s7 + $0xe0] sm:$0xff]  ;;  %v1606_v28 = vld [vmem:[%s4842_s7 + $0xf8] sm:$0xff] }
 0x5c9   : > { %v1650_v35 = vmul.f32 %v1586_v26, %v1416_v33  ;;  %3027 = vmatpush1.bf16.msra.mxu0 %v3362_v58  ;;  %v1605_v33 = vld [vmem:[%s4842_s7 + $0xf0] sm:$0xff] }
 0x5ca   : > { %3029 = vmatprep.subr.bf16.mxu0 %v3893_v56 }
 0x5cb   : > { %v1420_v55 = vpop.f32.mrb[14].mxu1  ;;  %2704 = vmatprep.mubr.msk.f32.mxu0 %vm1759_vm8, %v1650_v35 }
 0x5cc   : > { %v1422_v14 = vpop.f32.mrb[15].mxu1  ;;  %1951 = vmatmul.mubr.f32.gmra.mrb[44].mxu0 %v1649_v49  ;;  %v1651_v58 = vmul.f32 %v1587_v37, %v1420_v55  ;;  %v1607_v55 = vld [vmem:[%s4842_s7 + $0x100] sm:$0xff] }
 0x5cd   : > { %v1652_v50 = vmul.f32 %v1588_v15, %v1422_v14  ;;  %3031 = vmatpush1.bf16.msra.mxu0 %v3389_v4  ;;  %v1608_v15 = vld [vmem:[%s4842_s7 + $0x108] sm:$0xff] }
 0x5ce   : > { %3033 = vmatprep.subr.bf16.mxu0 %v3917_v3 }
 0x5cf   : > { %v1426_v56 = vpop.f32.mrb[16].mxu1  ;;  %2705 = vmatprep.mubr.msk.f32.mxu0 %vm1759_vm8, %v1652_v50  ;;  %v1610_v50 = vld [vmem:[%s4842_s7 + $0x118] sm:$0xff] }
 0x5d0   : > { %v1428_v32 = vpop.f32.mrb[17].mxu1  ;;  %1957 = vmatmul.mubr.f32.gmra.mrb[46].mxu0 %v1651_v58  ;;  %v1653_v4 = vmul.f32 %v1589_v54, %v1426_v56 }
 0x5d1   : > { %v1654_v41 = vmul.f32 %v1590_v25, %v1428_v32  ;;  %3035 = vmatpush1.bf16.msra.mxu0 %v3415_v19 }
 0x5d2   : > { %3037 = vmatprep.subr.bf16.mxu0 %v3941_v13 }
 0x5d3   : > { %v1432_v3 = vpop.f32.mrb[18].mxu1  ;;  %2706 = vmatprep.mubr.msk.f32.mxu0 %vm1759_vm8, %v1654_v41  ;;  %v1611_v41 = vld [vmem:[%s4842_s7 + $0x120] sm:$0xff] }
 0x5d4   : > { %v1434_v16 = vpop.f32.mrb[19].mxu1  ;;  %1963 = vmatmul.mubr.f32.gmra.mrb[48].mxu0 %v1653_v4  ;;  %v1655_v19 = vmul.f32 %v1591_v36, %v1432_v3  ;;  %v1614_v36 = vld [vmem:[%s4842_s7 + $0x138] sm:$0xff] }
 0x5d5   : > { %v1656_v59 = vmul.f32 %v1592_v42, %v1434_v16  ;;  %3039 = vmatpush1.bf16.msra.mxu0 %v3436_v31 }
 0x5d6   : > { %3041 = vmatprep.subr.bf16.mxu0 %v3292_v9 }
 0x5d7   : > { %v1438_v13 = vpop.f32.mrb[20].mxu1  ;;  %2707 = vmatprep.mubr.msk.f32.mxu0 %vm1759_vm8, %v1656_v59  ;;  %v1613_v59 = vld [vmem:[%s4842_s7 + $0x130] sm:$0xff] }
 0x5d8   : > { %v1440_v57 = vpop.f32.mrb[21].mxu1  ;;  %1969 = vmatmul.mubr.f32.gmra.mrb[50].mxu0 %v1655_v19  ;;  %v1657_v31 = vmul.f32 %v1593_v2, %v1438_v13  ;;  %v1616_v2 = vld [vmem:[%s4842_s7 + $0x148] sm:$0xff] }
 0x5d9   : > { %v1658_v29 = vmul.f32 %v1594_v1, %v1440_v57  ;;  %3043 = vmatpush1.bf16.msra.mxu0 %v3288_v5 }
 0x5da   : > { %3045 = vmatprep.subr.bf16.mxu0 %v4076_v44 }
 0x5db   : > { %v1444_v9 = vpop.f32.mrb[22].mxu1  ;;  %2708 = vmatprep.mubr.msk.f32.mxu0 %vm1759_vm8, %v1658_v29  ;;  %v1615_v29 = vld [vmem:[%s4842_s7 + $0x140] sm:$0xff] }
 0x5dc   : > { %v1446_v10 = vpop.f32.mrb[23].mxu1  ;;  %1975 = vmatmul.mubr.f32.gmra.mrb[52].mxu0 %v1657_v31  ;;  %v1659_v5 = vmul.f32 %v1595_v8, %v1444_v9  ;;  %v1618_v8 = vld [vmem:[%s4842_s7 + $0x158] sm:$0xff] }
 0x5dd   : > { %v1660_v17 = vmul.f32 %v1596_v27, %v1446_v10  ;;  %3047 = vmatpush1.bf16.msra.mxu0 %v3307_v23 }
 0x5de   : > { %3049 = vmatprep.subr.bf16.mxu0 %v4084_v40 }
 0x5df   : > { %v1450_v44 = vpop.f32.mrb[24].mxu1  ;;  %2709 = vmatprep.mubr.msk.f32.mxu0 %vm1759_vm8, %v1660_v17  ;;  %v1617_v17 = vld [vmem:[%s4842_s7 + $0x150] sm:$0xff] }
 0x5e0   : > { %v1452_v48 = vpop.f32.mrb[25].mxu1  ;;  %1981 = vmatmul.mubr.f32.gmra.mrb[54].mxu0 %v1659_v5  ;;  %v1661_v23 = vmul.f32 %v1597_v45, %v1450_v44  ;;  %v1620_v45 = vld [vmem:[%s4842_s7 + $0x168] sm:$0xff] }
 0x5e1   : > { %v1662_v52 = vmul.f32 %v1598_v61, %v1452_v48  ;;  %3051 = vmatpush1.bf16.msra.mxu0 %v3323_v34 }
 0x5e2   : > { %3053 = vmatprep.subr.bf16.mxu0 %v4092_v62 }
 0x5e3   : > { %v1456_v40 = vpop.f32.mrb[26].mxu1  ;;  %2710 = vmatprep.mubr.msk.f32.mxu0 %vm1759_vm8, %v1662_v52  ;;  %v1619_v52 = vld [vmem:[%s4842_s7 + $0x160] sm:$0xff] }
 0x5e4   : > { %v1458_v20 = vpop.f32.mrb[27].mxu1  ;;  %1987 = vmatmul.mubr.f32.gmra.mrb[56].mxu0 %v1661_v23  ;;  %v1663_v34 = vmul.f32 %v1599_v18, %v1456_v40  ;;  %v1622_v18 = vld [vmem:[%s4842_s7 + $0x178] sm:$0xff] }
 0x5e5   : > { %v1664_v30 = vmul.f32 %v1600_v63, %v1458_v20  ;;  %3055 = vmatpush1.bf16.msra.mxu0 %v3333_v43 }
 0x5e6   : > { %3057 = vmatprep.subr.bf16.mxu0 %v4100_v22 }
 0x5e7   : > { %v1462_v62 = vpop.f32.mrb[28].mxu1  ;;  %2711 = vmatprep.mubr.msk.f32.mxu0 %vm1759_vm8, %v1664_v30  ;;  %v1621_v30 = vld [vmem:[%s4842_s7 + $0x170] sm:$0xff] }
 0x5e8   : > { %v1464_v39 = vpop.f32.mrb[29].mxu1  ;;  %1993 = vmatmul.mubr.f32.gmra.mrb[58].mxu0 %v1663_v34  ;;  %v1665_v43 = vmul.f32 %v1601_v6, %v1462_v62  ;;  %v1624_v6 = vld [vmem:[%s4842_s7 + $0x188] sm:$0xff] }
 0x5e9   : > { %v1666_v47 = vmul.f32 %v1602_v51, %v1464_v39  ;;  %3059 = vmatpush1.bf16.msra.mxu0 %v3351_v53 }
 0x5ea   : > { %3061 = vmatprep.subr.bf16.mxu0 %v4108_v46 }
 0x5eb   : > { %v1468_v22 = vpop.f32.mrb[30].mxu1  ;;  %2712 = vmatprep.mubr.msk.f32.mxu0 %vm1759_vm8, %v1666_v47  ;;  %v1623_v47 = vld [vmem:[%s4842_s7 + $0x180] sm:$0xff] }
 0x5ec   : > { %v1470_v26 = vpop.f32.mrb[31].mxu1  ;;  %1999 = vmatmul.mubr.f32.gmra.mrb[60].mxu0 %v1665_v43  ;;  %v1667_v53 = vmul.f32 %v1603_v38, %v1468_v22  ;;  %v1626_v38 = vld [vmem:[%s4842_s7 + $0x198] sm:$0xff] }
 0x5ed   : > { %v1668_v21 = vmul.f32 %v1604_v7, %v1470_v26  ;;  %3063 = vmatpush1.bf16.msra.mxu0 %v3379_v0 }
 0x5ee   : > { %3065 = vmatprep.subr.bf16.mxu0 %v4117_v12 }
 0x5ef   : > { %v1474_v46 = vpop.f32.mrb[32].mxu1  ;;  %2713 = vmatprep.mubr.msk.f32.mxu0 %vm1759_vm8, %v1668_v21  ;;  %v1625_v21 = vld [vmem:[%s4842_s7 + $0x190] sm:$0xff] }
 0x5f0   : > { %v1476_v35 = vpop.f32.mrb[33].mxu1  ;;  %2005 = vmatmul.mubr.f32.gmra.mrb[62].mxu0 %v1667_v53  ;;  %v1669_v0 = vmul.f32 %v1605_v33, %v1474_v46  ;;  %v1628_v33 = vld [vmem:[%s4842_s7 + $0x1a8] sm:$0xff] }
 0x5f1   : > { %v1670_v49 = vmul.f32 %v1606_v28, %v1476_v35  ;;  %3067 = vmatpush1.bf16.msra.mxu0 %v3401_v11 }
 0x5f2   : > { %3069 = vmatprep.subr.bf16.mxu0 %v4126_v60  ;;  %v1609_v60 = vld [vmem:[%s4842_s7 + $0x110] sm:$0xff] }
 0x5f3   : > { %v1480_v12 = vpop.f32.mrb[34].mxu1  ;;  %2714 = vmatprep.mubr.msk.f32.mxu0 %vm1759_vm8, %v1670_v49  ;;  %v1627_v49 = vld [vmem:[%s4842_s7 + $0x1a0] sm:$0xff] }
 0x5f4   : > { %v1482_v37 = vpop.f32.mrb[35].mxu1  ;;  %2011 = vmatmul.mubr.f32.gmra.mrb[64].mxu0 %v1669_v0  ;;  %v1671_v11 = vmul.f32 %v1607_v55, %v1480_v12  ;;  %v1630_v55 = vld [vmem:[%s4842_s7 + $0x1b8] sm:$0xff] }
 0x5f5   : > { %v1672_v14 = vmul.f32 %v1608_v15, %v1482_v37  ;;  %3071 = vmatpush1.bf16.msra.mxu0 %v3425_v24  ;;  %v1612_v24 = vld [vmem:[%s4842_s7 + $0x128] sm:$0xff] }
 0x5f7   : > { %v1486_v58 = vpop.f32.mrb[36].mxu1  ;;  %2715 = vmatprep.mubr.msk.f32.mxu0 %vm1759_vm8, %v1672_v14  ;;  %v1629_v14 = vld [vmem:[%s4842_s7 + $0x1b0] sm:$0xff] }
 0x5f8   : > { %v1488_v25 = vpop.f32.mrb[37].mxu1  ;;  %2017 = vmatmul.mubr.f32.gmra.mrb[66].mxu0 %v1671_v11  ;;  %v1673_v54 = vmul.f32 %v1609_v60, %v1486_v58  ;;  %v1632_v60 = vld [vmem:[%s4842_s7 + $0x1c8] sm:$0xff] }
 0x5f9   : > { %v1674_v56 = vmul.f32 %v1610_v50, %v1488_v25 }
 0x5fb   : > { %v1492_v32 = vpop.f32.mrb[38].mxu1  ;;  %2716 = vmatprep.mubr.msk.f32.mxu0 %vm1759_vm8, %v1674_v56  ;;  %v1631_v56 = vld [vmem:[%s4842_s7 + $0x1c0] sm:$0xff] }
 0x5fc   : > { %v1494_v4 = vpop.f32.mrb[39].mxu1  ;;  %2023 = vmatmul.mubr.f32.gmra.mrb[68].mxu0 %v1673_v54  ;;  %v1675_v3 = vmul.f32 %v1611_v41, %v1492_v32  ;;  %v1634_v41 = vld [vmem:[%s4842_s7 + $0x1d8] sm:$0xff] }
 0x5fd   : > { %v1676_v42 = vmul.f32 %v1612_v24, %v1494_v4 }
 0x5ff   : > { %v1498_v16 = vpop.f32.mrb[40].mxu1  ;;  %2717 = vmatprep.mubr.msk.f32.mxu0 %vm1759_vm8, %v1676_v42  ;;  %v1633_v42 = vld [vmem:[%s4842_s7 + $0x1d0] sm:$0xff] }
 0x600   : > { %v1500_v19 = vpop.f32.mrb[41].mxu1  ;;  %2029 = vmatmul.mubr.f32.gmra.mrb[70].mxu0 %v1675_v3  ;;  %v1677_v13 = vmul.f32 %v1613_v59, %v1498_v16  ;;  %v1636_v59 = vld [vmem:[%s4842_s7 + $0x1e8] sm:$0xff] }
 0x601   : > { %v1678_v1 = vmul.f32 %v1614_v36, %v1500_v19 }
 0x603   : > { %v1504_v57 = vpop.f32.mrb[42].mxu1  ;;  %2718 = vmatprep.mubr.msk.f32.mxu0 %vm1759_vm8, %v1678_v1  ;;  %v1635_v1 = vld [vmem:[%s4842_s7 + $0x1e0] sm:$0xff] }
 0x604   : > { %v1506_v31 = vpop.f32.mrb[43].mxu1  ;;  %2035 = vmatmul.mubr.f32.gmra.mrb[72].mxu0 %v1677_v13  ;;  %v1679_v9 = vmul.f32 %v1615_v29, %v1504_v57  ;;  %v1638_v29 = vld [vmem:[%s4842_s7 + $0x1f8] sm:$0xff] }
 0x605   : > { %v1680_v27 = vmul.f32 %v1616_v2, %v1506_v31 }
 0x607   : > { %v1510_v10 = vpop.f32.mrb[44].mxu1  ;;  %2719 = vmatprep.mubr.msk.f32.mxu0 %vm1759_vm8, %v1680_v27  ;;  %v1637_v27 = vld [vmem:[%s4842_s7 + $0x1f0] sm:$0xff] }
 0x608   : > { %v1512_v5 = vpop.f32.mrb[45].mxu1  ;;  %2041 = vmatmul.mubr.f32.gmra.mrb[74].mxu0 %v1679_v9  ;;  %v1681_v44 = vmul.f32 %v1617_v17, %v1510_v10  ;;  %v2114_v17 = vld [vmem:[%s4836_s1 + $0x8] sm:$0xff] }
 0x609   : > { %v1682_v61 = vmul.f32 %v1618_v8, %v1512_v5 }
 0x60b   : > { %v1516_v48 = vpop.f32.mrb[46].mxu1  ;;  %2720 = vmatprep.mubr.msk.f32.mxu0 %vm1759_vm8, %v1682_v61 }
 0x60c   : > { %v1518_v23 = vpop.f32.mrb[47].mxu1  ;;  %2047 = vmatmul.mubr.f32.gmra.mrb[76].mxu0 %v1681_v44  ;;  %v1683_v40 = vmul.f32 %v1619_v52, %v1516_v48  ;;  %v2113_v44 = vld [vmem:[%s4836_s1] sm:$0xff] }
 0x60d   : > { %v1684_v63 = vmul.f32 %v1620_v45, %v1518_v23  ;;  %v2116_v45 = vld [vmem:[%s4836_s1 + $0x18] sm:$0xff]  ;;  %v2115_v23 = vld [vmem:[%s4836_s1 + $0x10] sm:$0xff] }
 0x60f   : > { %v1522_v20 = vpop.f32.mrb[48].mxu1  ;;  %2721 = vmatprep.mubr.msk.f32.mxu0 %vm1759_vm8, %v1684_v63  ;;  %v2118_v63 = vld [vmem:[%s4836_s1 + $0x28] sm:$0xff] }
 0x610   : > { %v1524_v34 = vpop.f32.mrb[49].mxu1  ;;  %2053 = vmatmul.mubr.f32.gmra.mrb[78].mxu0 %v1683_v40  ;;  %v1685_v62 = vmul.f32 %v1621_v30, %v1522_v20  ;;  %v2117_v20 = vld [vmem:[%s4836_s1 + $0x20] sm:$0xff]  ;;  %v2120_v30 = vld [vmem:[%s4836_s1 + $0x38] sm:$0xff] }
 0x611   : > { %v1686_v51 = vmul.f32 %v1622_v18, %v1524_v34 }
 0x613   : > { %v1528_v39 = vpop.f32.mrb[50].mxu1  ;;  %2722 = vmatprep.mubr.msk.f32.mxu0 %vm1759_vm8, %v1686_v51 }
 0x614   : > { %v1530_v43 = vpop.f32.mrb[51].mxu1  ;;  %2059 = vmatmul.mubr.f32.gmra.mrb[80].mxu0 %v1685_v62  ;;  %v1687_v22 = vmul.f32 %v1623_v47, %v1528_v39  ;;  %v2119_v62 = vld [vmem:[%s4836_s1 + $0x30] sm:$0xff] }
 0x615   : > { %v1688_v7 = vmul.f32 %v1624_v6, %v1530_v43  ;;  %v2122_v6 = vld [vmem:[%s4836_s1 + $0x48] sm:$0xff]  ;;  %v2121_v43 = vld [vmem:[%s4836_s1 + $0x40] sm:$0xff] }
 0x617   : > { %v1534_v26 = vpop.f32.mrb[52].mxu1  ;;  %2723 = vmatprep.mubr.msk.f32.mxu0 %vm1759_vm8, %v1688_v7  ;;  %v2124_v7 = vld [vmem:[%s4836_s1 + $0x58] sm:$0xff] }
 0x618   : > { %v1536_v53 = vpop.f32.mrb[53].mxu1  ;;  %2065 = vmatmul.mubr.f32.gmra.mrb[82].mxu0 %v1687_v22  ;;  %v1689_v46 = vmul.f32 %v1625_v21, %v1534_v26  ;;  %v2123_v26 = vld [vmem:[%s4836_s1 + $0x50] sm:$0xff]  ;;  %v2126_v21 = vld [vmem:[%s4836_s1 + $0x68] sm:$0xff] }
 0x619   : > { %v1690_v28 = vmul.f32 %v1626_v38, %v1536_v53 }
 0x61b   : > { %v1540_v35 = vpop.f32.mrb[54].mxu1  ;;  %2724 = vmatprep.mubr.msk.f32.mxu0 %vm1759_vm8, %v1690_v28 }
 0x61c   : > { %v1542_v0 = vpop.f32.mrb[55].mxu1  ;;  %2071 = vmatmul.mubr.f32.gmra.mrb[84].mxu0 %v1689_v46  ;;  %v1691_v12 = vmul.f32 %v1627_v49, %v1540_v35  ;;  %v2125_v46 = vld [vmem:[%s4836_s1 + $0x60] sm:$0xff] }
 0x61d   : > { %v1692_v15 = vmul.f32 %v1628_v33, %v1542_v0  ;;  %v2128_v33 = vld [vmem:[%s4836_s1 + $0x78] sm:$0xff]  ;;  %v2127_v0 = vld [vmem:[%s4836_s1 + $0x70] sm:$0xff] }
 0x61f   : > { %v1546_v37 = vpop.f32.mrb[56].mxu1  ;;  %2725 = vmatprep.mubr.msk.f32.mxu0 %vm1759_vm8, %v1692_v15 }
 0x620   : > { %v1548_v11 = vpop.f32.mrb[57].mxu1  ;;  %2077 = vmatmul.mubr.f32.gmra.mrb[86].mxu0 %v1691_v12  ;;  %v1693_v58 = vmul.f32 %v1629_v14, %v1546_v37 }
 0x621   : > { %v1694_v50 = vmul.f32 %v1630_v55, %v1548_v11 }
 0x623   : > { %v1552_v25 = vpop.f32.mrb[58].mxu1  ;;  %2726 = vmatprep.mubr.msk.f32.mxu0 %vm1759_vm8, %v1694_v50 }
 0x624   : > { %v1554_v54 = vpop.f32.mrb[59].mxu1  ;;  %2083 = vmatmul.mubr.f32.gmra.mrb[88].mxu0 %v1693_v58  ;;  %v1695_v32 = vmul.f32 %v1631_v56, %v1552_v25 }
 0x625   : > { %v1696_v24 = vmul.f32 %v1632_v60, %v1554_v54 }
 0x627   : > { %v1558_v4 = vpop.f32.mrb[60].mxu1  ;;  %2727 = vmatprep.mubr.msk.f32.mxu0 %vm1759_vm8, %v1696_v24 }
 0x628   : > { %v1560_v3 = vpop.f32.mrb[61].mxu1  ;;  %2089 = vmatmul.mubr.f32.gmra.mrb[90].mxu0 %v1695_v32  ;;  %v1697_v16 = vmul.f32 %v1633_v42, %v1558_v4 }
 0x629   : > { %v1698_v36 = vmul.f32 %v1634_v41, %v1560_v3 }
 0x62b   : > { %v1564_v19 = vpop.f32.mrb[62].mxu1  ;;  %2728 = vmatprep.mubr.msk.f32.mxu0 %vm1759_vm8, %v1698_v36 }
 0x62c   : > { %v1566_v13 = vpop.f32.mrb[63].mxu1  ;;  %2095 = vmatmul.mubr.f32.gmra.mrb[92].mxu0 %v1697_v16  ;;  %v1699_v57 = vmul.f32 %v1635_v1, %v1564_v19 }
 0x62d   : > { %v1700_v2 = vmul.f32 %v1636_v59, %v1566_v13 }
 0x62f   : > { %v1570_v31 = vpop.f32.mrb[64].mxu1  ;;  %2729 = vmatprep.mubr.msk.f32.mxu0 %vm1759_vm8, %v1700_v2 }
 0x630   : > { %v1572_v9 = vpop.f32.mrb[65].mxu1  ;;  %2101 = vmatmul.mubr.f32.gmra.mrb[94].mxu0 %v1699_v57  ;;  %v1701_v10 = vmul.f32 %v1637_v27, %v1570_v31 }
 0x631   : > { %v1702_v8 = vmul.f32 %v1638_v29, %v1572_v9 }
 0x633   : > { %2730 = vmatprep.mubr.msk.f32.mxu0 %vm1759_vm8, %v1702_v8  ;;  %v4540_v5 = vpop.f32.mrb[66].mxu1 }
 0x634   : > { %2107 = vmatmul.mubr.f32.gmra.mrb[96].mxu0 %v1701_v10  ;;  %v4542_v61 = vpop.f32.mrb[67].mxu1 }
 0x635   : > { %2241 = vmatprep.mubr.f32.mxu0 %v2114_v17 }
 0x637   : > { %v4550_v48 = vpop.f32.mrb[68].mxu1 }
 0x638   : > { %2242 = vmatmul.mubr.f32.vlgmr.msra.gmra.mrb[34].mxu0 %v2113_v44  ;;  %v4552_v52 = vpop.f32.mrb[69].mxu1 }
 0x639   : > { %2247 = vmatprep.mubr.f32.mxu0 %v2116_v45 }
 0x63b   : > { %v4560_v40 = vpop.f32.mrb[70].mxu1 }
 0x63c   : > { %2248 = vmatmul.mubr.f32.gmra.mrb[36].mxu0 %v2115_v23  ;;  %v4562_v18 = vpop.f32.mrb[71].mxu1 }
 0x63d   : > { %2253 = vmatprep.mubr.f32.mxu0 %v2118_v63 }
 0x63f   : > { %v4570_v34 = vpop.f32.mrb[72].mxu1 }
 0x640   : > { %2254 = vmatmul.mubr.f32.gmra.mrb[38].mxu0 %v2117_v20  ;;  %v4572_v51 = vpop.f32.mrb[73].mxu1 }
 0x641   : > { %2259 = vmatprep.mubr.f32.mxu0 %v2120_v30 }
 0x643   : > { %v4580_v39 = vpop.f32.mrb[74].mxu1 }
 0x644   : > { %2260 = vmatmul.mubr.f32.gmra.mrb[40].mxu0 %v2119_v62  ;;  %v4582_v47 = vpop.f32.mrb[75].mxu1 }
 0x645   : > { %2265 = vmatprep.mubr.f32.mxu0 %v2122_v6 }
 0x647   : > { %v4590_v22 = vpop.f32.mrb[76].mxu1 }
 0x648   : > { %2266 = vmatmul.mubr.f32.gmra.mrb[42].mxu0 %v2121_v43  ;;  %v4592_v38 = vpop.f32.mrb[77].mxu1 }
 0x649   : > { %2271 = vmatprep.mubr.f32.mxu0 %v2124_v7 }
 0x64b   : > { %v4600_v53 = vpop.f32.mrb[78].mxu1 }
 0x64c   : > { %2272 = vmatmul.mubr.f32.gmra.mrb[44].mxu0 %v2123_v26  ;;  %v4602_v28 = vpop.f32.mrb[79].mxu1 }
 0x64d   : > { %2277 = vmatprep.mubr.f32.mxu0 %v2126_v21 }
 0x64f   : > { %v4610_v35 = vpop.f32.mrb[80].mxu1 }
 0x650   : > { %2278 = vmatmul.mubr.f32.gmra.mrb[46].mxu0 %v2125_v46  ;;  %v4612_v49 = vpop.f32.mrb[81].mxu1 }
 0x651   : > { %2283 = vmatprep.mubr.f32.mxu0 %v2128_v33 }
 0x653   : > { %v4617_v15 = vpop.f32.mrb[82].mxu1 }
 0x654   : > { %2284 = vmatmul.mubr.f32.gmra.mrb[48].mxu0 %v2127_v0  ;;  %v4619_v12 = vpop.f32.mrb[83].mxu1 }
 0x657   : > { %v4621_v55 = vpop.f32.mrb[84].mxu1 }
 0x658   : > { %v4623_v37 = vpop.f32.mrb[85].mxu1 }
 0x65b   : > { %v4625_v14 = vpop.f32.mrb[86].mxu1 }
 0x65c   : > { %v4627_v11 = vpop.f32.mrb[87].mxu1 }
 0x65f   : > { %v4629_v50 = vpop.f32.mrb[88].mxu1 }
 0x660   : > { %v4631_v58 = vpop.f32.mrb[89].mxu1 }
 0x663   : > { %v4633_v60 = vpop.f32.mrb[90].mxu1 }
 0x664   : > { %v4635_v25 = vpop.f32.mrb[91].mxu1 }
 0x667   : > { %v4637_v56 = vpop.f32.mrb[92].mxu1 }
 0x668   : > { %v4639_v54 = vpop.f32.mrb[93].mxu1 }
 0x66b   : > { %v4641_v24 = vpop.f32.mrb[94].mxu1 }
 0x66c   : > { %v4643_v32 = vpop.f32.mrb[95].mxu1 }
 0x66f   : > { %v4645_v41 = vpop.f32.mrb[96].mxu1 }
 0x670   : > { %v4647_v4 = vpop.f32.mrb[97].mxu1 }
 0x673   : > { %v4649_v42 = vpop.f32.mrb[98].mxu1 }
 0x674   : > { %v4651_v3 = vpop.f32.mrb[99].mxu1 }
 0x677   : > { %v4653_v36 = vpop.f32.mrb[100].mxu1 }
 0x678   : > { %v4655_v16 = vpop.f32.mrb[101].mxu1 }
 0x67b   : > { %v4657_v59 = vpop.f32.mrb[102].mxu1 }
 0x67c   : > { %v4659_v19 = vpop.f32.mrb[103].mxu1 }
 0x67f   : > { %v4661_v1 = vpop.f32.mrb[104].mxu1 }
 0x680   : > { %v4663_v13 = vpop.f32.mrb[105].mxu1 }
 0x683   : > { %v4665_v2 = vpop.f32.mrb[106].mxu1 }
 0x684   : > { %v4667_v57 = vpop.f32.mrb[107].mxu1 }
 0x687   : > { %v4669_v29 = vpop.f32.mrb[108].mxu1 }
 0x688   : > { %v4671_v31 = vpop.f32.mrb[109].mxu1 }
 0x68b   : > { %v4673_v27 = vpop.f32.mrb[110].mxu1 }
 0x68c   : > { %v4675_v9 = vpop.f32.mrb[111].mxu1 }
 0x68f   : > { %v4677_v8 = vpop.f32.mrb[112].mxu1 }
 0x690   : > { %v4679_v10 = vpop.f32.mrb[113].mxu1 }
 0x6ab   : > { %v1970_v17 = vpop.f32.mrb[50].mxu0 }
 0x6ac   : > { %v2292_v44 = vadd.f32 %v4540_v5, %v1970_v17  ;;  %v1972_v45 = vpop.f32.mrb[51].mxu0 }
 0x6ad   : > { %v2294_v23 = vadd.f32 %v4542_v61, %v1972_v45 }
 0x6ae   : > { %2450 = vst [vmem:[%s4686_s14 + $0x80] sm:$0xff] %v2292_v44 }
 0x6af   : > { %2451 = vst.msk [vmem:[%s4686_s14 + $0x88] sm:$0xff] %vm453_vm0, %v2294_v23  ;;  %v1976_v63 = vpop.f32.mrb[52].mxu0 }
 0x6b0   : > { %v2298_v20 = vadd.f32 %v4550_v48, %v1976_v63  ;;  %v1978_v30 = vpop.f32.mrb[53].mxu0 }
 0x6b1   : > { %v2300_v62 = vadd.f32 %v4552_v52, %v1978_v30 }
 0x6b2   : > { %2452 = vst [vmem:[%s4686_s14 + $0x90] sm:$0xff] %v2298_v20 }
 0x6b3   : > { %2453 = vst.msk [vmem:[%s4686_s14 + $0x98] sm:$0xff] %vm453_vm0, %v2300_v62  ;;  %v1982_v6 = vpop.f32.mrb[54].mxu0 }
 0x6b4   : > { %v2304_v5 = vadd.f32 %v4560_v40, %v1982_v6  ;;  %v1984_v61 = vpop.f32.mrb[55].mxu0 }
 0x6b5   : > { %v2306_v43 = vadd.f32 %v4562_v18, %v1984_v61 }
 0x6b6   : > { %2454 = vst [vmem:[%s4686_s14 + $0xa0] sm:$0xff] %v2304_v5 }
 0x6b7   : > { %2455 = vst.msk [vmem:[%s4686_s14 + $0xa8] sm:$0xff] %vm453_vm0, %v2306_v43  ;;  %v1988_v7 = vpop.f32.mrb[56].mxu0 }
 0x6b8   : > { %v2310_v48 = vadd.f32 %v4570_v34, %v1988_v7  ;;  %v1990_v52 = vpop.f32.mrb[57].mxu0 }
 0x6b9   : > { %v2312_v26 = vadd.f32 %v4572_v51, %v1990_v52 }
 0x6ba   : > { %2456 = vst [vmem:[%s4686_s14 + $0xb0] sm:$0xff] %v2310_v48 }
 0x6bb   : > { %2457 = vst.msk [vmem:[%s4686_s14 + $0xb8] sm:$0xff] %vm453_vm0, %v2312_v26  ;;  %v1994_v21 = vpop.f32.mrb[58].mxu0 }
 0x6bc   : > { %v2316_v40 = vadd.f32 %v4580_v39, %v1994_v21  ;;  %v1996_v18 = vpop.f32.mrb[59].mxu0 }
 0x6bd   : > { %v2318_v46 = vadd.f32 %v4582_v47, %v1996_v18 }
 0x6be   : > { %2458 = vst [vmem:[%s4686_s14 + $0xc0] sm:$0xff] %v2316_v40 }
 0x6bf   : > { %2459 = vst.msk [vmem:[%s4686_s14 + $0xc8] sm:$0xff] %vm453_vm0, %v2318_v46  ;;  %v2000_v33 = vpop.f32.mrb[60].mxu0 }
 0x6c0   : > { %v2322_v34 = vadd.f32 %v4590_v22, %v2000_v33  ;;  %v2002_v51 = vpop.f32.mrb[61].mxu0 }
 0x6c1   : > { %v2324_v0 = vadd.f32 %v4592_v38, %v2002_v51 }
 0x6c2   : > { %2460 = vst [vmem:[%s4686_s14 + $0xd0] sm:$0xff] %v2322_v34 }
 0x6c3   : > { %2461 = vst.msk [vmem:[%s4686_s14 + $0xd8] sm:$0xff] %vm453_vm0, %v2324_v0  ;;  %v2006_v17 = vpop.f32.mrb[62].mxu0 }
 0x6c4   : > { %v2328_v39 = vadd.f32 %v4600_v53, %v2006_v17  ;;  %v2008_v47 = vpop.f32.mrb[63].mxu0 }
 0x6c5   : > { %v2330_v44 = vadd.f32 %v4602_v28, %v2008_v47 }
 0x6c6   : > { %2462 = vst [vmem:[%s4686_s14 + $0xe0] sm:$0xff] %v2328_v39 }
 0x6c7   : > { %2463 = vst.msk [vmem:[%s4686_s14 + $0xe8] sm:$0xff] %vm453_vm0, %v2330_v44  ;;  %v2012_v45 = vpop.f32.mrb[64].mxu0 }
 0x6c8   : > { %v2334_v22 = vadd.f32 %v4610_v35, %v2012_v45  ;;  %v2014_v38 = vpop.f32.mrb[65].mxu0 }
 0x6c9   : > { %v2336_v23 = vadd.f32 %v4612_v49, %v2014_v38 }
 0x6ca   : > { %2464 = vst [vmem:[%s4686_s14 + $0xf0] sm:$0xff] %v2334_v22 }
 0x6cb   : > { %2465 = vst.msk [vmem:[%s4686_s14 + $0xf8] sm:$0xff] %vm453_vm0, %v2336_v23  ;;  %v2018_v63 = vpop.f32.mrb[66].mxu0 }
 0x6cc   : > { %v2340_v53 = vadd.f32 %v4617_v15, %v2018_v63  ;;  %v2020_v28 = vpop.f32.mrb[67].mxu0 }
 0x6cd   : > { %v2342_v20 = vadd.f32 %v4619_v12, %v2020_v28 }
 0x6ce   : > { %2466 = vst [vmem:[%s4686_s14 + $0x100] sm:$0xff] %v2340_v53 }
 0x6cf   : > { %2467 = vst.msk [vmem:[%s4686_s14 + $0x108] sm:$0xff] %vm453_vm0, %v2342_v20  ;;  %v2024_v30 = vpop.f32.mrb[68].mxu0 }
 0x6d0   : > { %v2346_v35 = vadd.f32 %v4621_v55, %v2024_v30  ;;  %v2026_v49 = vpop.f32.mrb[69].mxu0 }
 0x6d1   : > { %v2348_v62 = vadd.f32 %v4623_v37, %v2026_v49 }
 0x6d2   : > { %2468 = vst [vmem:[%s4686_s14 + $0x110] sm:$0xff] %v2346_v35 }
 0x6d3   : > { %2469 = vst.msk [vmem:[%s4686_s14 + $0x118] sm:$0xff] %vm453_vm0, %v2348_v62  ;;  %v2030_v6 = vpop.f32.mrb[70].mxu0 }
 0x6d4   : > { %v2352_v15 = vadd.f32 %v4625_v14, %v2030_v6  ;;  %v2032_v12 = vpop.f32.mrb[71].mxu0 }
 0x6d5   : > { %v2354_v5 = vadd.f32 %v4627_v11, %v2032_v12 }
 0x6d6   : > { %2470 = vst [vmem:[%s4686_s14 + $0x120] sm:$0xff] %v2352_v15 }
 0x6d7   : > { %2471 = vst.msk [vmem:[%s4686_s14 + $0x128] sm:$0xff] %vm453_vm0, %v2354_v5  ;;  %v2036_v61 = vpop.f32.mrb[72].mxu0 }
 0x6d8   : > { %v2358_v55 = vadd.f32 %v4629_v50, %v2036_v61  ;;  %v2038_v37 = vpop.f32.mrb[73].mxu0 }
 0x6d9   : > { %v2360_v43 = vadd.f32 %v4631_v58, %v2038_v37 }
 0x6da   : > { %2472 = vst [vmem:[%s4686_s14 + $0x130] sm:$0xff] %v2358_v55 }
 0x6db   : > { %2473 = vst.msk [vmem:[%s4686_s14 + $0x138] sm:$0xff] %vm453_vm0, %v2360_v43  ;;  %v2042_v7 = vpop.f32.mrb[74].mxu0 }
 0x6dc   : > { %v2364_v14 = vadd.f32 %v4633_v60, %v2042_v7  ;;  %v2044_v11 = vpop.f32.mrb[75].mxu0 }
 0x6dd   : > { %v2366_v48 = vadd.f32 %v4635_v25, %v2044_v11 }
 0x6de   : > { %2474 = vst [vmem:[%s4686_s14 + $0x140] sm:$0xff] %v2364_v14 }
 0x6df   : > { %2475 = vst.msk [vmem:[%s4686_s14 + $0x148] sm:$0xff] %vm453_vm0, %v2366_v48  ;;  %v2048_v52 = vpop.f32.mrb[76].mxu0 }
 0x6e0   : > { %v2370_v50 = vadd.f32 %v4637_v56, %v2048_v52  ;;  %v2050_v58 = vpop.f32.mrb[77].mxu0 }
 0x6e1   : > { %v2372_v26 = vadd.f32 %v4639_v54, %v2050_v58 }
 0x6e2   : > { %2476 = vst [vmem:[%s4686_s14 + $0x150] sm:$0xff] %v2370_v50 }
 0x6e3   : > { %2477 = vst.msk [vmem:[%s4686_s14 + $0x158] sm:$0xff] %vm453_vm0, %v2372_v26  ;;  %v2054_v21 = vpop.f32.mrb[78].mxu0 }
 0x6e4   : > { %v2376_v60 = vadd.f32 %v4641_v24, %v2054_v21  ;;  %v2056_v25 = vpop.f32.mrb[79].mxu0 }
 0x6e5   : > { %v2378_v40 = vadd.f32 %v4643_v32, %v2056_v25 }
 0x6e6   : > { %2478 = vst [vmem:[%s4686_s14 + $0x160] sm:$0xff] %v2376_v60 }
 0x6e7   : > { %2479 = vst.msk [vmem:[%s4686_s14 + $0x168] sm:$0xff] %vm453_vm0, %v2378_v40  ;;  %v2060_v18 = vpop.f32.mrb[80].mxu0 }
 0x6e8   : > { %v2382_v56 = vadd.f32 %v4645_v41, %v2060_v18  ;;  %v2062_v54 = vpop.f32.mrb[81].mxu0 }
 0x6e9   : > { %v2384_v46 = vadd.f32 %v4647_v4, %v2062_v54 }
 0x6ea   : > { %2480 = vst [vmem:[%s4686_s14 + $0x170] sm:$0xff] %v2382_v56 }
 0x6eb   : > { %2481 = vst.msk [vmem:[%s4686_s14 + $0x178] sm:$0xff] %vm453_vm0, %v2384_v46  ;;  %v2066_v33 = vpop.f32.mrb[82].mxu0 }
 0x6ec   : > { %v2388_v24 = vadd.f32 %v4649_v42, %v2066_v33  ;;  %v2068_v32 = vpop.f32.mrb[83].mxu0 }
 0x6ed   : > { %v2390_v34 = vadd.f32 %v4651_v3, %v2068_v32 }
 0x6ee   : > { %2482 = vst [vmem:[%s4686_s14 + $0x180] sm:$0xff] %v2388_v24 }
 0x6ef   : > { %2483 = vst.msk [vmem:[%s4686_s14 + $0x188] sm:$0xff] %vm453_vm0, %v2390_v34  ;;  %v2072_v51 = vpop.f32.mrb[84].mxu0 }
 0x6f0   : > { %v2394_v41 = vadd.f32 %v4653_v36, %v2072_v51  ;;  %v2074_v4 = vpop.f32.mrb[85].mxu0 }
 0x6f1   : > { %v2396_v0 = vadd.f32 %v4655_v16, %v2074_v4 }
 0x6f2   : > { %2484 = vst [vmem:[%s4686_s14 + $0x190] sm:$0xff] %v2394_v41 }
 0x6f3   : > { %2485 = vst.msk [vmem:[%s4686_s14 + $0x198] sm:$0xff] %vm453_vm0, %v2396_v0  ;;  %v2078_v17 = vpop.f32.mrb[86].mxu0 }
 0x6f4   : > { %v2400_v42 = vadd.f32 %v4657_v59, %v2078_v17  ;;  %v2080_v3 = vpop.f32.mrb[87].mxu0 }
 0x6f5   : > { %v2402_v39 = vadd.f32 %v4659_v19, %v2080_v3 }
 0x6f6   : > { %2486 = vst [vmem:[%s4686_s14 + $0x1a0] sm:$0xff] %v2400_v42 }
 0x6f7   : > { %2487 = vst.msk [vmem:[%s4686_s14 + $0x1a8] sm:$0xff] %vm453_vm0, %v2402_v39  ;;  %v2084_v47 = vpop.f32.mrb[88].mxu0 }
 0x6f8   : > { %v2406_v36 = vadd.f32 %v4661_v1, %v2084_v47  ;;  %v2086_v16 = vpop.f32.mrb[89].mxu0 }
 0x6f9   : > { %v2408_v44 = vadd.f32 %v4663_v13, %v2086_v16 }
 0x6fa   : > { %2488 = vst [vmem:[%s4686_s14 + $0x1b0] sm:$0xff] %v2406_v36 }
 0x6fb   : > { %2489 = vst.msk [vmem:[%s4686_s14 + $0x1b8] sm:$0xff] %vm453_vm0, %v2408_v44  ;;  %v2090_v45 = vpop.f32.mrb[90].mxu0 }
 0x6fc   : > { %v2412_v59 = vadd.f32 %v4665_v2, %v2090_v45  ;;  %v2092_v19 = vpop.f32.mrb[91].mxu0 }
 0x6fd   : > { %v2414_v22 = vadd.f32 %v4667_v57, %v2092_v19 }
 0x6fe   : > { %2490 = vst [vmem:[%s4686_s14 + $0x1c0] sm:$0xff] %v2412_v59 }
 0x6ff   : > { %2491 = vst.msk [vmem:[%s4686_s14 + $0x1c8] sm:$0xff] %vm453_vm0, %v2414_v22  ;;  %v2096_v38 = vpop.f32.mrb[92].mxu0 }
 0x700   : > { %v2418_v1 = vadd.f32 %v4669_v29, %v2096_v38  ;;  %v2098_v13 = vpop.f32.mrb[93].mxu0 }
 0x701   : > { %v2420_v23 = vadd.f32 %v4671_v31, %v2098_v13 }
 0x702   : > { %2492 = vst [vmem:[%s4686_s14 + $0x1d0] sm:$0xff] %v2418_v1 }
 0x703   : > { %2493 = vst.msk [vmem:[%s4686_s14 + $0x1d8] sm:$0xff] %vm453_vm0, %v2420_v23  ;;  %v2102_v2 = vpop.f32.mrb[94].mxu0 }
 0x704   : > { %v2424_v63 = vadd.f32 %v4673_v27, %v2102_v2  ;;  %v2104_v57 = vpop.f32.mrb[95].mxu0 }
 0x705   : > { %v2426_v53 = vadd.f32 %v4675_v9, %v2104_v57 }
 0x706   : > { %2494 = vst [vmem:[%s4686_s14 + $0x1e0] sm:$0xff] %v2424_v63 }
 0x707   : > { %2495 = vst.msk [vmem:[%s4686_s14 + $0x1e8] sm:$0xff] %vm453_vm0, %v2426_v53  ;;  %v2108_v29 = vpop.f32.mrb[96].mxu0 }
 0x708   : > { %v2430_v31 = vadd.f32 %v4677_v8, %v2108_v29  ;;  %v2110_v28 = vpop.f32.mrb[97].mxu0 }
 0x709   : > { %v2432_v20 = vadd.f32 %v4679_v10, %v2110_v28 }
 0x70a   : > { %2496 = vst [vmem:[%s4686_s14 + $0x1f0] sm:$0xff] %v2430_v31 }
 0x70b   : > { %2497 = vst.msk [vmem:[%s4686_s14 + $0x1f8] sm:$0xff] %vm453_vm0, %v2432_v20  ;;  %v2243_v27 = vpop.f32.mrb[34].mxu0 }
 0x70c   : > { %2434 = vst [vmem:[%s4686_s14] sm:$0xff] %v2243_v27  ;;  %v2245_v9 = vpop.f32.mrb[35].mxu0 }
 0x70d   : > { %2435 = vst.msk [vmem:[%s4686_s14 + $0x8] sm:$0xff] %vm453_vm0, %v2245_v9 }
 0x70f   : > { %v2249_v30 = vpop.f32.mrb[36].mxu0 }
 0x710   : > { %2436 = vst [vmem:[%s4686_s14 + $0x10] sm:$0xff] %v2249_v30  ;;  %v2251_v8 = vpop.f32.mrb[37].mxu0 }
 0x711   : > { %2437 = vst.msk [vmem:[%s4686_s14 + $0x18] sm:$0xff] %vm453_vm0, %v2251_v8 }
 0x713   : > { %v2255_v10 = vpop.f32.mrb[38].mxu0 }
 0x714   : > { %2438 = vst [vmem:[%s4686_s14 + $0x20] sm:$0xff] %v2255_v10  ;;  %v2257_v35 = vpop.f32.mrb[39].mxu0 }
 0x715   : > { %2439 = vst.msk [vmem:[%s4686_s14 + $0x28] sm:$0xff] %vm453_vm0, %v2257_v35 }
 0x717   : > { %v2261_v49 = vpop.f32.mrb[40].mxu0 }
 0x718   : > { %2440 = vst [vmem:[%s4686_s14 + $0x30] sm:$0xff] %v2261_v49  ;;  %v2263_v62 = vpop.f32.mrb[41].mxu0 }
 0x719   : > { %2441 = vst.msk [vmem:[%s4686_s14 + $0x38] sm:$0xff] %vm453_vm0, %v2263_v62 }
 0x71b   : > { %v2267_v6 = vpop.f32.mrb[42].mxu0 }
 0x71c   : > { %2442 = vst [vmem:[%s4686_s14 + $0x40] sm:$0xff] %v2267_v6  ;;  %v2269_v15 = vpop.f32.mrb[43].mxu0 }
 0x71d   : > { %2443 = vst.msk [vmem:[%s4686_s14 + $0x48] sm:$0xff] %vm453_vm0, %v2269_v15 }
 0x71f   : > { %v2273_v12 = vpop.f32.mrb[44].mxu0 }
 0x720   : > { %2444 = vst [vmem:[%s4686_s14 + $0x50] sm:$0xff] %v2273_v12  ;;  %v2275_v5 = vpop.f32.mrb[45].mxu0 }
 0x721   : > { %2445 = vst.msk [vmem:[%s4686_s14 + $0x58] sm:$0xff] %vm453_vm0, %v2275_v5 }
 0x723   : > { %v2279_v61 = vpop.f32.mrb[46].mxu0 }
 0x724   : > { %2446 = vst [vmem:[%s4686_s14 + $0x60] sm:$0xff] %v2279_v61  ;;  %v2281_v55 = vpop.f32.mrb[47].mxu0 }
 0x725   : > { %2447 = vst.msk [vmem:[%s4686_s14 + $0x68] sm:$0xff] %vm453_vm0, %v2281_v55 }
 0x727   : > { %v2285_v37 = vpop.f32.mrb[48].mxu0 }
 0x728   : > { %2448 = vst [vmem:[%s4686_s14 + $0x70] sm:$0xff] %v2285_v37  ;;  %v2287_v43 = vpop.f32.mrb[49].mxu0 }
 0x729   : > { %2449 = vst.msk [vmem:[%s4686_s14 + $0x78] sm:$0xff] %vm453_vm0, %v2287_v43 }
 0x72a PF: > { %s21_s13 = sadd.s32 1, %s3202_s13  }
 0x72b   : > { %p18_p5 = scmp.ge.s32.totalorder %s21_s13, 6  }
 0x72d   :  { %20 = sbr.rel (!%p18_p5) target bundleno = 1 (0x1), region = 106 }

</bundles_post_ra>
